<compile_context>
chip_gen: v7x
topology: tpu7x:2x2x1
jax: 0.10.0
libtpu: 0.0.40
codegen_flags: <defaults>
</compile_context>

<pallas_src>
import functools
import numpy as np

import jax
import jax.numpy as jnp
from jax import lax
from jax.experimental import pallas as pl
from jax.experimental.pallas import tpu as pltpu

START_TAG = '<START>'
STOP_TAG = '<STOP>'
tag_to_ix = {'O': 0, 'B-FOO': 1, 'I-FOO': 2, 'B-RES': 3, 'I-RES': 4,
             'B-LOC': 5, 'I-LOC': 6, 'B-PRI': 7, 'I-PRI': 8,
             START_TAG: 9, STOP_TAG: 10}


# ----------------------------------------------------------------------------
# Fused kernel: embed-gather -> BiLSTM -> hidden2tag -> Viterbi -> backtrack
# ----------------------------------------------------------------------------
def _bilstm_crf_kernel(T, H, K, V, start_ix, stop_ix,
                       sent_ref,      # SMEM (T,) int32 token ids
                       proj_ref,      # (2V+1, 8H) fused embed + input proj (+ bias row)
                       whh_ref,       # (2H, 8H) block-diagonal recurrent weights
                       hc0_ref,       # (2, 2H)  row0 = [h_f|h_b], row1 = [c_f|c_b]
                       wtag_t_ref,    # (2H, K)  hidden2tag for row-oriented feats
                       wtag_ref,      # (K, 2H)  hidden2tag for column-oriented feats
                       btag_row_ref,  # (1, K)
                       btag_col_ref,  # (K, 1)
                       trans_t_ref,   # (K, K)   trans_t[p, n] = transitions[n, p]
                       trans_ref,     # (K, K)   transitions[n, p]
                       out_ref):      # (1, 128) f32: [path(T) | start_tag | score | 0...]
    H2, H4, H6, H8 = 2 * H, 4 * H, 6 * H, 8 * H

    # ---- fused embedding gather + bidirectional input projection + bias -----------
    # one MXU matmul: rows of a (T, 2V+1) one-hot pick (fwd token, reversed token,
    # bias row) out of the precomputed projection table.
    lane_v = lax.broadcasted_iota(jnp.int32, (1, 2 * V + 1), 1)
    oh_rows = []
    for s in range(T):
        tf = sent_ref[s]                    # forward-direction token at time s
        tb = sent_ref[T - 1 - s] + V        # backward-direction token at time T-1-s
        hit = (lane_v == tf) | (lane_v == tb) | (lane_v == 2 * V)
        oh_rows.append(hit.astype(jnp.float32))
    onehot = jnp.concatenate(oh_rows, axis=0)                                 # (T, 2V+1)
    xp = jnp.dot(onehot, proj_ref[...], preferred_element_type=jnp.float32)   # (T, 8H)

    # ---- merged fwd/bwd LSTM recurrence (hidden rows stay in vregs) ---------------
    # gate lanes: [i_f,i_b | f_f,f_b | o_f,o_b | g_f,g_b]; g lanes pre-scaled x2 so
    # tanh(g) = 2*sigmoid(2g) - 1 comes from the single sigmoid pass (2 EUP pushes/step).
    whh = whh_ref[...]
    h = hc0_ref[0:1, :]          # (1, 2H) = [h_f | h_b]
    c = hc0_ref[1:2, :]
    hf_rows, hb_rows = [], []
    for s in range(T):           # unrolled: T=8 (use fori_loop + VMEM scratch for long T)
        pre = xp[s:s + 1, :] + jnp.dot(h, whh, preferred_element_type=jnp.float32)
        sig = jax.nn.sigmoid(pre)                       # one EUP pass over all 8H lanes
        i_g = sig[:, 0:H2]
        f_g = sig[:, H2:H4]
        o_g = sig[:, H4:H6]
        g = 2.0 * sig[:, H6:H8] - 1.0                   # == tanh(g_preact)
        c = f_g * c + i_g * g                           # (1, 2H) = [c_f | c_b]
        h = o_g * jnp.tanh(c)                           # (1, 2H) = [h_f | h_b]
        hf_rows.append(h[:, 0:H])                       # fwd hidden of time s
        hb_rows.append(h[:, H:H2])                      # bwd hidden of time T-1-s

    hcat = jnp.concatenate(
        [jnp.concatenate(hf_rows, axis=0),
         jnp.concatenate(list(reversed(hb_rows)), axis=0)], axis=1)           # (T, 2H)

    # ---- hidden2tag in BOTH orientations, once, off the Viterbi serial chain ------
    feats_r = (jnp.dot(hcat, wtag_t_ref[...], preferred_element_type=jnp.float32)
               + btag_row_ref[...])                                           # (T, K)
    feats_c = (lax.dot_general(wtag_ref[...], hcat,
                               dimension_numbers=(((1,), (1,)), ((), ())),
                               preferred_element_type=jnp.float32)
               + btag_col_ref[...])                                           # (K, T)

    # ---- Viterbi forward recursion with alternating row/column forward_var --------
    trans_t = trans_t_ref[...]
    trans = trans_ref[...]
    sub_iota_K1 = lax.broadcasted_iota(jnp.int32, (K, 1), 0)
    sub_iota_KK = lax.broadcasted_iota(jnp.int32, (K, K), 0)
    lane_iota_KK = lax.broadcasted_iota(jnp.int32, (K, K), 1)
    lane_iota_1K = lax.broadcasted_iota(jnp.int32, (1, K), 1)

    fv_col = jnp.where(sub_iota_K1 == start_ix, 0.0, -10000.0).astype(jnp.float32)
    fv_row = None
    bps = []      # backpointers in vregs: row (1,K) for even t, column (K,1) for odd t
    for t in range(T):
        if t % 2 == 0:     # column in -> row out
            M = trans_t + fv_col                              # M[p, n] = fv[p] + T[n, p]
            maxv = jnp.max(M, axis=0, keepdims=True)          # (1, K)
            bps.append(jnp.min(jnp.where(M == maxv, sub_iota_KK, K),
                               axis=0, keepdims=True))        # first-argmax over prev p
            fv_row = maxv + feats_r[t:t + 1, :]
        else:              # row in -> column out
            M = trans + fv_row                                # M[n, p] = T[n, p] + fv[p]
            maxv = jnp.max(M, axis=1, keepdims=True)          # (K, 1)
            bps.append(jnp.min(jnp.where(M == maxv, lane_iota_KK, K),
                               axis=1, keepdims=True))
            fv_col = maxv + feats_c[:, t:t + 1]

    if T % 2 == 0:         # last forward_var is a column
        terminal = fv_col + trans_t[:, stop_ix:stop_ix + 1]                   # (K, 1)
        best_score = jnp.max(terminal, axis=0, keepdims=True)                 # (1, 1)
        best = jnp.min(jnp.where(terminal == best_score, sub_iota_K1, K),
                       axis=0, keepdims=True)                                 # (1, 1)
    else:                  # last forward_var is a row
        terminal = fv_row + trans[stop_ix:stop_ix + 1, :]                     # (1, K)
        best_score = jnp.max(terminal, axis=1, keepdims=True)
        best = jnp.min(jnp.where(terminal == best_score, lane_iota_1K, K),
                       axis=1, keepdims=True)

    # ---- in-kernel backtrack, assembled into a single lane-dense output slab ------
    OUT = 128
    lane_out = lax.broadcasted_iota(jnp.int32, (1, OUT), 1)
    slab = jnp.where(lane_out == T - 1, best, 0)
    for t in range(T - 1, 0, -1):
        bp = bps[t]
        if t % 2 == 0:     # row backpointers: select lane `best`
            best = jnp.min(jnp.where(lane_iota_1K == best, bp, K),
                           axis=1, keepdims=True)
        else:              # column backpointers: select sublane `best`
            best = jnp.min(jnp.where(sub_iota_K1 == best, bp, K),
                           axis=0, keepdims=True)
        slab = jnp.where(lane_out == t - 1, best, slab)
    start_tag = jnp.min(jnp.where(lane_iota_1K == best, bps[0], K),
                        axis=1, keepdims=True)
    slab = jnp.where(lane_out == T, start_tag, slab)

    slab_f = slab.astype(jnp.float32)
    slab_f = jnp.where(lane_out == T + 1, best_score, slab_f)
    out_ref[...] = slab_f                                     # single (1,128) store


def bilstm_crf_forward(sentence, params):
    """Mirrors BiLSTM_CRF.forward.  Returns a (1, 128) f32 slab:
       lanes [0:T) = Viterbi path, lane T = backtracked start tag, lane T+1 = score."""
    H, K, V = params['H'], params['K'], params['V']
    T = int(sentence.shape[0])
    vmem = pl.BlockSpec(memory_space=pltpu.MemorySpace.VMEM)
    smem = pl.BlockSpec(memory_space=pltpu.MemorySpace.SMEM)
    ins = (sentence.astype(jnp.int32),
           params['proj'], params['whh'], params['hc0'],
           params['wtag_t'], params['wtag'], params['btag_row'], params['btag_col'],
           params['trans_t'], params['trans'])
    return pl.pallas_call(
        functools.partial(_bilstm_crf_kernel, T, H, K, V,
                          tag_to_ix[START_TAG], tag_to_ix[STOP_TAG]),
        out_shape=jax.ShapeDtypeStruct((1, 128), jnp.float32),
        in_specs=[smem] + [vmem] * (len(ins) - 1),
        out_specs=vmem,
    )(*ins)


# ----------------------------------------------------------------------------
# Host-side parameter packing (PyTorch layout -> fused-kernel layout)
# ----------------------------------------------------------------------------
def pack_params(emb_table, wih_f, whh_f, bih_f, bhh_f, wih_b, whh_b, bih_b, bhh_b,
                wtag, btag, transitions, h0, c0, H, K):
    E = wih_f.shape[1]
    V = emb_table.shape[0]
    hp = lax.Precision.HIGHEST

    def gate_blocks(m):   # PyTorch row order [i, f, g, o], blocks of H
        return {'i': m[0:H], 'f': m[H:2 * H], 'g': m[2 * H:3 * H], 'o': m[3 * H:4 * H]}

    gf_x, gb_x = gate_blocks(wih_f), gate_blocks(wih_b)
    gf_h, gb_h = gate_blocks(whh_f), gate_blocks(whh_b)
    bf, bb = bih_f + bhh_f, bih_b + bhh_b
    bf_g, bb_g = gate_blocks(bf), gate_blocks(bb)

    order = ['i', 'f', 'o', 'g']     # sigmoid gates first, tanh gate last
    zE = jnp.zeros((E, H), jnp.float32)
    zH = jnp.zeros((H, H), jnp.float32)

    wxf_cols, wxb_cols, whh_cols, b_cols = [], [], [], []
    # lane layout (8 blocks of width H): [i_f, i_b, f_f, f_b, o_f, o_b, g_f, g_b]
    for gname in order:
        wxf_cols += [gf_x[gname].T, zE]
        wxb_cols += [zE, gb_x[gname].T]
        whh_cols += [jnp.concatenate([gf_h[gname].T, zH], axis=0),   # rows 0:H  <- h_fwd
                     jnp.concatenate([zH, gb_h[gname].T], axis=0)]   # rows H:2H <- h_bwd
        b_cols += [bf_g[gname], bb_g[gname]]

    wxf = jnp.concatenate(wxf_cols, axis=1)            # (E, 8H)
    wxb = jnp.concatenate(wxb_cols, axis=1)            # (E, 8H)
    whh_big = jnp.concatenate(whh_cols, axis=1)        # (2H, 8H)
    b_big = jnp.concatenate(b_cols).reshape(1, 8 * H)  # (1, 8H)

    # Fold embedding table + both input projections + bias into ONE table so the
    # kernel's single (one-hot @ proj) matmul does the gather and the projection:
    #   rows [0:V)   <- emb_table @ wxf   (picked by the forward token)
    #   rows [V:2V)  <- emb_table @ wxb   (picked by the reversed token)
    #   row   2V     <- combined bias     (picked by the always-on lane)
    proj = jnp.concatenate([jnp.dot(emb_table, wxf, precision=hp),
                            jnp.dot(emb_table, wxb, precision=hp),
                            b_big], axis=0)            # (2V+1, 8H)

    # Pre-scale g-gate lanes by 2 so in-kernel tanh(g) = 2*sigmoid(2g) - 1.
    g_scale = jnp.concatenate([jnp.ones((1, 6 * H), jnp.float32),
                               jnp.full((1, 2 * H), 2.0, jnp.float32)], axis=1)
    proj = proj * g_scale
    whh_big = whh_big * g_scale

    return dict(
        H=H, K=K, V=V,
        proj=proj,                         # (2V+1, 8H)
        whh=whh_big,                       # (2H, 8H)
        hc0=jnp.stack([jnp.concatenate([h0[0], h0[1]], axis=-1),
                       jnp.concatenate([c0[0], c0[1]], axis=-1)], axis=0),   # (2, 2H)
        wtag_t=wtag.T,                     # (2H, K)
        wtag=wtag,                         # (K, 2H)
        btag_row=btag.reshape(1, K),
        btag_col=btag.reshape(K, 1),
        trans_t=transitions.T,             # trans_t[p, n] = transitions[n, p]
        trans=transitions,                 # transitions[n, p]
    )


# ----------------------------------------------------------------------------
if __name__ == "__main__":
    vocab_size = 20
    embedding_dim = 8
    hidden_dim = 32
    H = hidden_dim // 2          # per-direction hidden size (16)
    K = len(tag_to_ix)           # 11 tags
    T = 8                        # sentence length

    key = jax.random.PRNGKey(0)
    ks = jax.random.split(key, 20)
    bound_lstm = 1.0 / np.sqrt(H)
    bound_lin = 1.0 / np.sqrt(hidden_dim)

    def unif(k, shape, b):
        return jax.random.uniform(k, shape, jnp.float32, -b, b)

    emb_table = jax.random.normal(ks[0], (vocab_size, embedding_dim), jnp.float32)

    wih_f = unif(ks[1], (4 * H, embedding_dim), bound_lstm)
    whh_f = unif(ks[2], (4 * H, H), bound_lstm)
    bih_f = unif(ks[3], (4 * H,), bound_lstm)
    bhh_f = unif(ks[4], (4 * H,), bound_lstm)
    wih_b = unif(ks[5], (4 * H, embedding_dim), bound_lstm)
    whh_b = unif(ks[6], (4 * H, H), bound_lstm)
    bih_b = unif(ks[7], (4 * H,), bound_lstm)
    bhh_b = unif(ks[8], (4 * H,), bound_lstm)

    wtag = unif(ks[9], (K, hidden_dim), bound_lin)
    btag = unif(ks[10], (K,), bound_lin)

    transitions = jax.random.normal(ks[11], (K, K), jnp.float32)
    transitions = transitions.at[tag_to_ix[START_TAG], :].set(-10000.0)
    transitions = transitions.at[:, tag_to_ix[STOP_TAG]].set(-10000.0)

    # deterministic stand-in for self.init_hidden()'s torch.randn(2, 1, H)
    h0 = jax.random.normal(ks[12], (2, H), jnp.float32)
    c0 = jax.random.normal(ks[13], (2, H), jnp.float32)

    sentence = jax.random.randint(ks[14], (T,), 0, vocab_size)

    params = pack_params(emb_table, wih_f, whh_f, bih_f, bhh_f,
                         wih_b, whh_b, bih_b, bhh_b,
                         wtag, btag, transitions, h0, c0, H, K)

    slab = bilstm_crf_forward(sentence, params)
    jax.block_until_ready(slab)

    out = np.asarray(slab)[0]
    tag_seq = [int(x) for x in out[:T]]       # Viterbi best path
    start_tag = int(out[T])                   # backtracked start tag
    path_score = float(out[T + 1])            # Viterbi path score
    assert len(tag_seq) == T
    assert start_tag == tag_to_ix[START_TAG]  # mirrors the module's backtrack assert
    print("KERNEL_OK")
</pallas_src>

<mosaic_0001>
module attributes {stable_mosaic.version = 11 : i64} {
  func.func @_bilstm_crf_kernel(%arg0: memref<8xi32, #tpu.memory_space<smem>>, %arg1: memref<41x128xf32, #tpu.memory_space<vmem>>, %arg2: memref<32x128xf32, #tpu.memory_space<vmem>>, %arg3: memref<2x32xf32, #tpu.memory_space<vmem>>, %arg4: memref<32x11xf32, #tpu.memory_space<vmem>>, %arg5: memref<11x32xf32, #tpu.memory_space<vmem>>, %arg6: memref<1x11xf32, #tpu.memory_space<vmem>>, %arg7: memref<11x1xf32, #tpu.memory_space<vmem>>, %arg8: memref<11x11xf32, #tpu.memory_space<vmem>>, %arg9: memref<11x11xf32, #tpu.memory_space<vmem>>, %arg10: memref<1x128xf32, #tpu.memory_space<vmem>>) attributes {dimension_semantics = [], scalar_prefetch = 0 : i64, scratch_operands = 0 : i64, tpu.core_type = #tpu.core_type<tc>} {
    %0 = tpu.iota {dimensions = array<i32: 1>} : vector<1x41xi32>
    %c0 = arith.constant 0 : index
    %1 = memref.load %arg0[%c0] : memref<8xi32, #tpu.memory_space<smem>>
    %c7 = arith.constant 7 : index
    %2 = memref.load %arg0[%c7] : memref<8xi32, #tpu.memory_space<smem>>
    %c20_i32 = arith.constant 20 : i32
    %3 = arith.addi %2, %c20_i32 : i32
    %4 = vector.broadcast %1 : i32 to vector<1x41xi32>
    %5 = arith.cmpi eq, %0, %4 : vector<1x41xi32>
    %6 = vector.broadcast %3 : i32 to vector<1x41xi32>
    %7 = arith.cmpi eq, %0, %6 : vector<1x41xi32>
    %8 = arith.ori %5, %7 : vector<1x41xi1>
    %c40_i32 = arith.constant 40 : i32
    %9 = vector.broadcast %c40_i32 : i32 to vector<1x41xi32>
    %10 = arith.cmpi eq, %0, %9 : vector<1x41xi32>
    %11 = arith.ori %8, %10 : vector<1x41xi1>
    %12 = arith.extui %11 : vector<1x41xi1> to vector<1x41xi32>
    %13 = arith.sitofp %12 : vector<1x41xi32> to vector<1x41xf32>
    %c1 = arith.constant 1 : index
    %14 = memref.load %arg0[%c1] : memref<8xi32, #tpu.memory_space<smem>>
    %c6 = arith.constant 6 : index
    %15 = memref.load %arg0[%c6] : memref<8xi32, #tpu.memory_space<smem>>
    %c20_i32_0 = arith.constant 20 : i32
    %16 = arith.addi %15, %c20_i32_0 : i32
    %17 = vector.broadcast %14 : i32 to vector<1x41xi32>
    %18 = arith.cmpi eq, %0, %17 : vector<1x41xi32>
    %19 = vector.broadcast %16 : i32 to vector<1x41xi32>
    %20 = arith.cmpi eq, %0, %19 : vector<1x41xi32>
    %21 = arith.ori %18, %20 : vector<1x41xi1>
    %c40_i32_1 = arith.constant 40 : i32
    %22 = vector.broadcast %c40_i32_1 : i32 to vector<1x41xi32>
    %23 = arith.cmpi eq, %0, %22 : vector<1x41xi32>
    %24 = arith.ori %21, %23 : vector<1x41xi1>
    %25 = arith.extui %24 : vector<1x41xi1> to vector<1x41xi32>
    %26 = arith.sitofp %25 : vector<1x41xi32> to vector<1x41xf32>
    %c2 = arith.constant 2 : index
    %27 = memref.load %arg0[%c2] : memref<8xi32, #tpu.memory_space<smem>>
    %c5 = arith.constant 5 : index
    %28 = memref.load %arg0[%c5] : memref<8xi32, #tpu.memory_space<smem>>
    %c20_i32_2 = arith.constant 20 : i32
    %29 = arith.addi %28, %c20_i32_2 : i32
    %30 = vector.broadcast %27 : i32 to vector<1x41xi32>
    %31 = arith.cmpi eq, %0, %30 : vector<1x41xi32>
    %32 = vector.broadcast %29 : i32 to vector<1x41xi32>
    %33 = arith.cmpi eq, %0, %32 : vector<1x41xi32>
    %34 = arith.ori %31, %33 : vector<1x41xi1>
    %c40_i32_3 = arith.constant 40 : i32
    %35 = vector.broadcast %c40_i32_3 : i32 to vector<1x41xi32>
    %36 = arith.cmpi eq, %0, %35 : vector<1x41xi32>
    %37 = arith.ori %34, %36 : vector<1x41xi1>
    %38 = arith.extui %37 : vector<1x41xi1> to vector<1x41xi32>
    %39 = arith.sitofp %38 : vector<1x41xi32> to vector<1x41xf32>
    %c3 = arith.constant 3 : index
    %40 = memref.load %arg0[%c3] : memref<8xi32, #tpu.memory_space<smem>>
    %c4 = arith.constant 4 : index
    %41 = memref.load %arg0[%c4] : memref<8xi32, #tpu.memory_space<smem>>
    %c20_i32_4 = arith.constant 20 : i32
    %42 = arith.addi %41, %c20_i32_4 : i32
    %43 = vector.broadcast %40 : i32 to vector<1x41xi32>
    %44 = arith.cmpi eq, %0, %43 : vector<1x41xi32>
    %45 = vector.broadcast %42 : i32 to vector<1x41xi32>
    %46 = arith.cmpi eq, %0, %45 : vector<1x41xi32>
    %47 = arith.ori %44, %46 : vector<1x41xi1>
    %c40_i32_5 = arith.constant 40 : i32
    %48 = vector.broadcast %c40_i32_5 : i32 to vector<1x41xi32>
    %49 = arith.cmpi eq, %0, %48 : vector<1x41xi32>
    %50 = arith.ori %47, %49 : vector<1x41xi1>
    %51 = arith.extui %50 : vector<1x41xi1> to vector<1x41xi32>
    %52 = arith.sitofp %51 : vector<1x41xi32> to vector<1x41xf32>
    %c4_6 = arith.constant 4 : index
    %53 = memref.load %arg0[%c4_6] : memref<8xi32, #tpu.memory_space<smem>>
    %c3_7 = arith.constant 3 : index
    %54 = memref.load %arg0[%c3_7] : memref<8xi32, #tpu.memory_space<smem>>
    %c20_i32_8 = arith.constant 20 : i32
    %55 = arith.addi %54, %c20_i32_8 : i32
    %56 = vector.broadcast %53 : i32 to vector<1x41xi32>
    %57 = arith.cmpi eq, %0, %56 : vector<1x41xi32>
    %58 = vector.broadcast %55 : i32 to vector<1x41xi32>
    %59 = arith.cmpi eq, %0, %58 : vector<1x41xi32>
    %60 = arith.ori %57, %59 : vector<1x41xi1>
    %c40_i32_9 = arith.constant 40 : i32
    %61 = vector.broadcast %c40_i32_9 : i32 to vector<1x41xi32>
    %62 = arith.cmpi eq, %0, %61 : vector<1x41xi32>
    %63 = arith.ori %60, %62 : vector<1x41xi1>
    %64 = arith.extui %63 : vector<1x41xi1> to vector<1x41xi32>
    %65 = arith.sitofp %64 : vector<1x41xi32> to vector<1x41xf32>
    %c5_10 = arith.constant 5 : index
    %66 = memref.load %arg0[%c5_10] : memref<8xi32, #tpu.memory_space<smem>>
    %c2_11 = arith.constant 2 : index
    %67 = memref.load %arg0[%c2_11] : memref<8xi32, #tpu.memory_space<smem>>
    %c20_i32_12 = arith.constant 20 : i32
    %68 = arith.addi %67, %c20_i32_12 : i32
    %69 = vector.broadcast %66 : i32 to vector<1x41xi32>
    %70 = arith.cmpi eq, %0, %69 : vector<1x41xi32>
    %71 = vector.broadcast %68 : i32 to vector<1x41xi32>
    %72 = arith.cmpi eq, %0, %71 : vector<1x41xi32>
    %73 = arith.ori %70, %72 : vector<1x41xi1>
    %c40_i32_13 = arith.constant 40 : i32
    %74 = vector.broadcast %c40_i32_13 : i32 to vector<1x41xi32>
    %75 = arith.cmpi eq, %0, %74 : vector<1x41xi32>
    %76 = arith.ori %73, %75 : vector<1x41xi1>
    %77 = arith.extui %76 : vector<1x41xi1> to vector<1x41xi32>
    %78 = arith.sitofp %77 : vector<1x41xi32> to vector<1x41xf32>
    %c6_14 = arith.constant 6 : index
    %79 = memref.load %arg0[%c6_14] : memref<8xi32, #tpu.memory_space<smem>>
    %c1_15 = arith.constant 1 : index
    %80 = memref.load %arg0[%c1_15] : memref<8xi32, #tpu.memory_space<smem>>
    %c20_i32_16 = arith.constant 20 : i32
    %81 = arith.addi %80, %c20_i32_16 : i32
    %82 = vector.broadcast %79 : i32 to vector<1x41xi32>
    %83 = arith.cmpi eq, %0, %82 : vector<1x41xi32>
    %84 = vector.broadcast %81 : i32 to vector<1x41xi32>
    %85 = arith.cmpi eq, %0, %84 : vector<1x41xi32>
    %86 = arith.ori %83, %85 : vector<1x41xi1>
    %c40_i32_17 = arith.constant 40 : i32
    %87 = vector.broadcast %c40_i32_17 : i32 to vector<1x41xi32>
    %88 = arith.cmpi eq, %0, %87 : vector<1x41xi32>
    %89 = arith.ori %86, %88 : vector<1x41xi1>
    %90 = arith.extui %89 : vector<1x41xi1> to vector<1x41xi32>
    %91 = arith.sitofp %90 : vector<1x41xi32> to vector<1x41xf32>
    %c7_18 = arith.constant 7 : index
    %92 = memref.load %arg0[%c7_18] : memref<8xi32, #tpu.memory_space<smem>>
    %c0_19 = arith.constant 0 : index
    %93 = memref.load %arg0[%c0_19] : memref<8xi32, #tpu.memory_space<smem>>
    %c20_i32_20 = arith.constant 20 : i32
    %94 = arith.addi %93, %c20_i32_20 : i32
    %95 = vector.broadcast %92 : i32 to vector<1x41xi32>
    %96 = arith.cmpi eq, %0, %95 : vector<1x41xi32>
    %97 = vector.broadcast %94 : i32 to vector<1x41xi32>
    %98 = arith.cmpi eq, %0, %97 : vector<1x41xi32>
    %99 = arith.ori %96, %98 : vector<1x41xi1>
    %c40_i32_21 = arith.constant 40 : i32
    %100 = vector.broadcast %c40_i32_21 : i32 to vector<1x41xi32>
    %101 = arith.cmpi eq, %0, %100 : vector<1x41xi32>
    %102 = arith.ori %99, %101 : vector<1x41xi1>
    %103 = arith.extui %102 : vector<1x41xi1> to vector<1x41xi32>
    %104 = arith.sitofp %103 : vector<1x41xi32> to vector<1x41xf32>
    %105 = tpu.concatenate %13, %26, %39, %52, %65, %78, %91, %104 in 0 : vector<1x41xf32>, vector<1x41xf32>, vector<1x41xf32>, vector<1x41xf32>, vector<1x41xf32>, vector<1x41xf32>, vector<1x41xf32>, vector<1x41xf32> -> vector<8x41xf32>
    %c0_22 = arith.constant 0 : index
    %c0_23 = arith.constant 0 : index
    %106 = vector.load %arg1[%c0_22, %c0_23] : memref<41x128xf32, #tpu.memory_space<vmem>>, vector<41x128xf32>
    %cst = arith.constant dense<0.000000e+00> : vector<8x128xf32>
    %107 = tpu.matmul %105, %106, %cst {dimension_numbers = #tpu.dot_dimension_numbers<[1], [0], [0], [1], [0, 0, 1, 1], [], []>} : vector<8x41xf32>, vector<41x128xf32>, vector<8x128xf32> -> vector<8x128xf32>
    %c0_24 = arith.constant 0 : index
    %c0_25 = arith.constant 0 : index
    %108 = vector.load %arg2[%c0_24, %c0_25] : memref<32x128xf32, #tpu.memory_space<vmem>>, vector<32x128xf32>
    %c0_26 = arith.constant 0 : index
    %c0_27 = arith.constant 0 : index
    %109 = vector.load %arg3[%c0_26, %c0_27] : memref<2x32xf32, #tpu.memory_space<vmem>>, vector<1x32xf32>
    %c1_28 = arith.constant 1 : index
    %c0_29 = arith.constant 0 : index
    %110 = vector.load %arg3[%c1_28, %c0_29] : memref<2x32xf32, #tpu.memory_space<vmem>>, vector<1x32xf32>
    %111 = vector.extract_strided_slice %107 {offsets = [0, 0], sizes = [1, 128], strides = [1, 1]} : vector<8x128xf32> to vector<1x128xf32>
    %cst_30 = arith.constant dense<0.000000e+00> : vector<1x128xf32>
    %112 = tpu.matmul %109, %108, %cst_30 {dimension_numbers = #tpu.dot_dimension_numbers<[1], [0], [0], [1], [0, 0, 1, 1], [], []>} : vector<1x32xf32>, vector<32x128xf32>, vector<1x128xf32> -> vector<1x128xf32>
    %113 = arith.addf %111, %112 : vector<1x128xf32>
    %114 = arith.negf %113 : vector<1x128xf32>
    %115 = math.exp %114 : vector<1x128xf32>
    %cst_31 = arith.constant 1.000000e+00 : f32
    %116 = vector.broadcast %cst_31 : f32 to vector<1x128xf32>
    %117 = arith.addf %116, %115 : vector<1x128xf32>
    %118 = arith.divf %116, %117 : vector<1x128xf32>
    %119 = vector.extract_strided_slice %118 {offsets = [0, 0], sizes = [1, 32], strides = [1, 1]} : vector<1x128xf32> to vector<1x32xf32>
    %120 = vector.extract_strided_slice %118 {offsets = [0, 32], sizes = [1, 32], strides = [1, 1]} : vector<1x128xf32> to vector<1x32xf32>
    %121 = vector.extract_strided_slice %118 {offsets = [0, 64], sizes = [1, 32], strides = [1, 1]} : vector<1x128xf32> to vector<1x32xf32>
    %122 = vector.extract_strided_slice %118 {offsets = [0, 96], sizes = [1, 32], strides = [1, 1]} : vector<1x128xf32> to vector<1x32xf32>
    %cst_32 = arith.constant 2.000000e+00 : f32
    %123 = vector.broadcast %cst_32 : f32 to vector<1x32xf32>
    %124 = arith.mulf %123, %122 : vector<1x32xf32>
    %cst_33 = arith.constant 1.000000e+00 : f32
    %125 = vector.broadcast %cst_33 : f32 to vector<1x32xf32>
    %126 = arith.subf %124, %125 : vector<1x32xf32>
    %127 = arith.mulf %120, %110 : vector<1x32xf32>
    %128 = arith.mulf %119, %126 : vector<1x32xf32>
    %129 = arith.addf %127, %128 : vector<1x32xf32>
    %130 = math.tanh %129 : vector<1x32xf32>
    %131 = arith.mulf %121, %130 : vector<1x32xf32>
    %132 = vector.extract_strided_slice %131 {offsets = [0, 0], sizes = [1, 16], strides = [1, 1]} : vector<1x32xf32> to vector<1x16xf32>
    %133 = vector.extract_strided_slice %131 {offsets = [0, 16], sizes = [1, 16], strides = [1, 1]} : vector<1x32xf32> to vector<1x16xf32>
    %134 = vector.extract_strided_slice %107 {offsets = [1, 0], sizes = [1, 128], strides = [1, 1]} : vector<8x128xf32> to vector<1x128xf32>
    %cst_34 = arith.constant dense<0.000000e+00> : vector<1x128xf32>
    %135 = tpu.matmul %131, %108, %cst_34 {dimension_numbers = #tpu.dot_dimension_numbers<[1], [0], [0], [1], [0, 0, 1, 1], [], []>} : vector<1x32xf32>, vector<32x128xf32>, vector<1x128xf32> -> vector<1x128xf32>
    %136 = arith.addf %134, %135 : vector<1x128xf32>
    %137 = arith.negf %136 : vector<1x128xf32>
    %138 = math.exp %137 : vector<1x128xf32>
    %cst_35 = arith.constant 1.000000e+00 : f32
    %139 = vector.broadcast %cst_35 : f32 to vector<1x128xf32>
    %140 = arith.addf %139, %138 : vector<1x128xf32>
    %141 = arith.divf %139, %140 : vector<1x128xf32>
    %142 = vector.extract_strided_slice %141 {offsets = [0, 0], sizes = [1, 32], strides = [1, 1]} : vector<1x128xf32> to vector<1x32xf32>
    %143 = vector.extract_strided_slice %141 {offsets = [0, 32], sizes = [1, 32], strides = [1, 1]} : vector<1x128xf32> to vector<1x32xf32>
    %144 = vector.extract_strided_slice %141 {offsets = [0, 64], sizes = [1, 32], strides = [1, 1]} : vector<1x128xf32> to vector<1x32xf32>
    %145 = vector.extract_strided_slice %141 {offsets = [0, 96], sizes = [1, 32], strides = [1, 1]} : vector<1x128xf32> to vector<1x32xf32>
    %cst_36 = arith.constant 2.000000e+00 : f32
    %146 = vector.broadcast %cst_36 : f32 to vector<1x32xf32>
    %147 = arith.mulf %146, %145 : vector<1x32xf32>
    %cst_37 = arith.constant 1.000000e+00 : f32
    %148 = vector.broadcast %cst_37 : f32 to vector<1x32xf32>
    %149 = arith.subf %147, %148 : vector<1x32xf32>
    %150 = arith.mulf %143, %129 : vector<1x32xf32>
    %151 = arith.mulf %142, %149 : vector<1x32xf32>
    %152 = arith.addf %150, %151 : vector<1x32xf32>
    %153 = math.tanh %152 : vector<1x32xf32>
    %154 = arith.mulf %144, %153 : vector<1x32xf32>
    %155 = vector.extract_strided_slice %154 {offsets = [0, 0], sizes = [1, 16], strides = [1, 1]} : vector<1x32xf32> to vector<1x16xf32>
    %156 = vector.extract_strided_slice %154 {offsets = [0, 16], sizes = [1, 16], strides = [1, 1]} : vector<1x32xf32> to vector<1x16xf32>
    %157 = vector.extract_strided_slice %107 {offsets = [2, 0], sizes = [1, 128], strides = [1, 1]} : vector<8x128xf32> to vector<1x128xf32>
    %cst_38 = arith.constant dense<0.000000e+00> : vector<1x128xf32>
    %158 = tpu.matmul %154, %108, %cst_38 {dimension_numbers = #tpu.dot_dimension_numbers<[1], [0], [0], [1], [0, 0, 1, 1], [], []>} : vector<1x32xf32>, vector<32x128xf32>, vector<1x128xf32> -> vector<1x128xf32>
    %159 = arith.addf %157, %158 : vector<1x128xf32>
    %160 = arith.negf %159 : vector<1x128xf32>
    %161 = math.exp %160 : vector<1x128xf32>
    %cst_39 = arith.constant 1.000000e+00 : f32
    %162 = vector.broadcast %cst_39 : f32 to vector<1x128xf32>
    %163 = arith.addf %162, %161 : vector<1x128xf32>
    %164 = arith.divf %162, %163 : vector<1x128xf32>
    %165 = vector.extract_strided_slice %164 {offsets = [0, 0], sizes = [1, 32], strides = [1, 1]} : vector<1x128xf32> to vector<1x32xf32>
    %166 = vector.extract_strided_slice %164 {offsets = [0, 32], sizes = [1, 32], strides = [1, 1]} : vector<1x128xf32> to vector<1x32xf32>
    %167 = vector.extract_strided_slice %164 {offsets = [0, 64], sizes = [1, 32], strides = [1, 1]} : vector<1x128xf32> to vector<1x32xf32>
    %168 = vector.extract_strided_slice %164 {offsets = [0, 96], sizes = [1, 32], strides = [1, 1]} : vector<1x128xf32> to vector<1x32xf32>
    %cst_40 = arith.constant 2.000000e+00 : f32
    %169 = vector.broadcast %cst_40 : f32 to vector<1x32xf32>
    %170 = arith.mulf %169, %168 : vector<1x32xf32>
    %cst_41 = arith.constant 1.000000e+00 : f32
    %171 = vector.broadcast %cst_41 : f32 to vector<1x32xf32>
    %172 = arith.subf %170, %171 : vector<1x32xf32>
    %173 = arith.mulf %166, %152 : vector<1x32xf32>
    %174 = arith.mulf %165, %172 : vector<1x32xf32>
    %175 = arith.addf %173, %174 : vector<1x32xf32>
    %176 = math.tanh %175 : vector<1x32xf32>
    %177 = arith.mulf %167, %176 : vector<1x32xf32>
    %178 = vector.extract_strided_slice %177 {offsets = [0, 0], sizes = [1, 16], strides = [1, 1]} : vector<1x32xf32> to vector<1x16xf32>
    %179 = vector.extract_strided_slice %177 {offsets = [0, 16], sizes = [1, 16], strides = [1, 1]} : vector<1x32xf32> to vector<1x16xf32>
    %180 = vector.extract_strided_slice %107 {offsets = [3, 0], sizes = [1, 128], strides = [1, 1]} : vector<8x128xf32> to vector<1x128xf32>
    %cst_42 = arith.constant dense<0.000000e+00> : vector<1x128xf32>
    %181 = tpu.matmul %177, %108, %cst_42 {dimension_numbers = #tpu.dot_dimension_numbers<[1], [0], [0], [1], [0, 0, 1, 1], [], []>} : vector<1x32xf32>, vector<32x128xf32>, vector<1x128xf32> -> vector<1x128xf32>
    %182 = arith.addf %180, %181 : vector<1x128xf32>
    %183 = arith.negf %182 : vector<1x128xf32>
    %184 = math.exp %183 : vector<1x128xf32>
    %cst_43 = arith.constant 1.000000e+00 : f32
    %185 = vector.broadcast %cst_43 : f32 to vector<1x128xf32>
    %186 = arith.addf %185, %184 : vector<1x128xf32>
    %187 = arith.divf %185, %186 : vector<1x128xf32>
    %188 = vector.extract_strided_slice %187 {offsets = [0, 0], sizes = [1, 32], strides = [1, 1]} : vector<1x128xf32> to vector<1x32xf32>
    %189 = vector.extract_strided_slice %187 {offsets = [0, 32], sizes = [1, 32], strides = [1, 1]} : vector<1x128xf32> to vector<1x32xf32>
    %190 = vector.extract_strided_slice %187 {offsets = [0, 64], sizes = [1, 32], strides = [1, 1]} : vector<1x128xf32> to vector<1x32xf32>
    %191 = vector.extract_strided_slice %187 {offsets = [0, 96], sizes = [1, 32], strides = [1, 1]} : vector<1x128xf32> to vector<1x32xf32>
    %cst_44 = arith.constant 2.000000e+00 : f32
    %192 = vector.broadcast %cst_44 : f32 to vector<1x32xf32>
    %193 = arith.mulf %192, %191 : vector<1x32xf32>
    %cst_45 = arith.constant 1.000000e+00 : f32
    %194 = vector.broadcast %cst_45 : f32 to vector<1x32xf32>
    %195 = arith.subf %193, %194 : vector<1x32xf32>
    %196 = arith.mulf %189, %175 : vector<1x32xf32>
    %197 = arith.mulf %188, %195 : vector<1x32xf32>
    %198 = arith.addf %196, %197 : vector<1x32xf32>
    %199 = math.tanh %198 : vector<1x32xf32>
    %200 = arith.mulf %190, %199 : vector<1x32xf32>
    %201 = vector.extract_strided_slice %200 {offsets = [0, 0], sizes = [1, 16], strides = [1, 1]} : vector<1x32xf32> to vector<1x16xf32>
    %202 = vector.extract_strided_slice %200 {offsets = [0, 16], sizes = [1, 16], strides = [1, 1]} : vector<1x32xf32> to vector<1x16xf32>
    %203 = vector.extract_strided_slice %107 {offsets = [4, 0], sizes = [1, 128], strides = [1, 1]} : vector<8x128xf32> to vector<1x128xf32>
    %cst_46 = arith.constant dense<0.000000e+00> : vector<1x128xf32>
    %204 = tpu.matmul %200, %108, %cst_46 {dimension_numbers = #tpu.dot_dimension_numbers<[1], [0], [0], [1], [0, 0, 1, 1], [], []>} : vector<1x32xf32>, vector<32x128xf32>, vector<1x128xf32> -> vector<1x128xf32>
    %205 = arith.addf %203, %204 : vector<1x128xf32>
    %206 = arith.negf %205 : vector<1x128xf32>
    %207 = math.exp %206 : vector<1x128xf32>
    %cst_47 = arith.constant 1.000000e+00 : f32
    %208 = vector.broadcast %cst_47 : f32 to vector<1x128xf32>
    %209 = arith.addf %208, %207 : vector<1x128xf32>
    %210 = arith.divf %208, %209 : vector<1x128xf32>
    %211 = vector.extract_strided_slice %210 {offsets = [0, 0], sizes = [1, 32], strides = [1, 1]} : vector<1x128xf32> to vector<1x32xf32>
    %212 = vector.extract_strided_slice %210 {offsets = [0, 32], sizes = [1, 32], strides = [1, 1]} : vector<1x128xf32> to vector<1x32xf32>
    %213 = vector.extract_strided_slice %210 {offsets = [0, 64], sizes = [1, 32], strides = [1, 1]} : vector<1x128xf32> to vector<1x32xf32>
    %214 = vector.extract_strided_slice %210 {offsets = [0, 96], sizes = [1, 32], strides = [1, 1]} : vector<1x128xf32> to vector<1x32xf32>
    %cst_48 = arith.constant 2.000000e+00 : f32
    %215 = vector.broadcast %cst_48 : f32 to vector<1x32xf32>
    %216 = arith.mulf %215, %214 : vector<1x32xf32>
    %cst_49 = arith.constant 1.000000e+00 : f32
    %217 = vector.broadcast %cst_49 : f32 to vector<1x32xf32>
    %218 = arith.subf %216, %217 : vector<1x32xf32>
    %219 = arith.mulf %212, %198 : vector<1x32xf32>
    %220 = arith.mulf %211, %218 : vector<1x32xf32>
    %221 = arith.addf %219, %220 : vector<1x32xf32>
    %222 = math.tanh %221 : vector<1x32xf32>
    %223 = arith.mulf %213, %222 : vector<1x32xf32>
    %224 = vector.extract_strided_slice %223 {offsets = [0, 0], sizes = [1, 16], strides = [1, 1]} : vector<1x32xf32> to vector<1x16xf32>
    %225 = vector.extract_strided_slice %223 {offsets = [0, 16], sizes = [1, 16], strides = [1, 1]} : vector<1x32xf32> to vector<1x16xf32>
    %226 = vector.extract_strided_slice %107 {offsets = [5, 0], sizes = [1, 128], strides = [1, 1]} : vector<8x128xf32> to vector<1x128xf32>
    %cst_50 = arith.constant dense<0.000000e+00> : vector<1x128xf32>
    %227 = tpu.matmul %223, %108, %cst_50 {dimension_numbers = #tpu.dot_dimension_numbers<[1], [0], [0], [1], [0, 0, 1, 1], [], []>} : vector<1x32xf32>, vector<32x128xf32>, vector<1x128xf32> -> vector<1x128xf32>
    %228 = arith.addf %226, %227 : vector<1x128xf32>
    %229 = arith.negf %228 : vector<1x128xf32>
    %230 = math.exp %229 : vector<1x128xf32>
    %cst_51 = arith.constant 1.000000e+00 : f32
    %231 = vector.broadcast %cst_51 : f32 to vector<1x128xf32>
    %232 = arith.addf %231, %230 : vector<1x128xf32>
    %233 = arith.divf %231, %232 : vector<1x128xf32>
    %234 = vector.extract_strided_slice %233 {offsets = [0, 0], sizes = [1, 32], strides = [1, 1]} : vector<1x128xf32> to vector<1x32xf32>
    %235 = vector.extract_strided_slice %233 {offsets = [0, 32], sizes = [1, 32], strides = [1, 1]} : vector<1x128xf32> to vector<1x32xf32>
    %236 = vector.extract_strided_slice %233 {offsets = [0, 64], sizes = [1, 32], strides = [1, 1]} : vector<1x128xf32> to vector<1x32xf32>
    %237 = vector.extract_strided_slice %233 {offsets = [0, 96], sizes = [1, 32], strides = [1, 1]} : vector<1x128xf32> to vector<1x32xf32>
    %cst_52 = arith.constant 2.000000e+00 : f32
    %238 = vector.broadcast %cst_52 : f32 to vector<1x32xf32>
    %239 = arith.mulf %238, %237 : vector<1x32xf32>
    %cst_53 = arith.constant 1.000000e+00 : f32
    %240 = vector.broadcast %cst_53 : f32 to vector<1x32xf32>
    %241 = arith.subf %239, %240 : vector<1x32xf32>
    %242 = arith.mulf %235, %221 : vector<1x32xf32>
    %243 = arith.mulf %234, %241 : vector<1x32xf32>
    %244 = arith.addf %242, %243 : vector<1x32xf32>
    %245 = math.tanh %244 : vector<1x32xf32>
    %246 = arith.mulf %236, %245 : vector<1x32xf32>
    %247 = vector.extract_strided_slice %246 {offsets = [0, 0], sizes = [1, 16], strides = [1, 1]} : vector<1x32xf32> to vector<1x16xf32>
    %248 = vector.extract_strided_slice %246 {offsets = [0, 16], sizes = [1, 16], strides = [1, 1]} : vector<1x32xf32> to vector<1x16xf32>
    %249 = vector.extract_strided_slice %107 {offsets = [6, 0], sizes = [1, 128], strides = [1, 1]} : vector<8x128xf32> to vector<1x128xf32>
    %cst_54 = arith.constant dense<0.000000e+00> : vector<1x128xf32>
    %250 = tpu.matmul %246, %108, %cst_54 {dimension_numbers = #tpu.dot_dimension_numbers<[1], [0], [0], [1], [0, 0, 1, 1], [], []>} : vector<1x32xf32>, vector<32x128xf32>, vector<1x128xf32> -> vector<1x128xf32>
    %251 = arith.addf %249, %250 : vector<1x128xf32>
    %252 = arith.negf %251 : vector<1x128xf32>
    %253 = math.exp %252 : vector<1x128xf32>
    %cst_55 = arith.constant 1.000000e+00 : f32
    %254 = vector.broadcast %cst_55 : f32 to vector<1x128xf32>
    %255 = arith.addf %254, %253 : vector<1x128xf32>
    %256 = arith.divf %254, %255 : vector<1x128xf32>
    %257 = vector.extract_strided_slice %256 {offsets = [0, 0], sizes = [1, 32], strides = [1, 1]} : vector<1x128xf32> to vector<1x32xf32>
    %258 = vector.extract_strided_slice %256 {offsets = [0, 32], sizes = [1, 32], strides = [1, 1]} : vector<1x128xf32> to vector<1x32xf32>
    %259 = vector.extract_strided_slice %256 {offsets = [0, 64], sizes = [1, 32], strides = [1, 1]} : vector<1x128xf32> to vector<1x32xf32>
    %260 = vector.extract_strided_slice %256 {offsets = [0, 96], sizes = [1, 32], strides = [1, 1]} : vector<1x128xf32> to vector<1x32xf32>
    %cst_56 = arith.constant 2.000000e+00 : f32
    %261 = vector.broadcast %cst_56 : f32 to vector<1x32xf32>
    %262 = arith.mulf %261, %260 : vector<1x32xf32>
    %cst_57 = arith.constant 1.000000e+00 : f32
    %263 = vector.broadcast %cst_57 : f32 to vector<1x32xf32>
    %264 = arith.subf %262, %263 : vector<1x32xf32>
    %265 = arith.mulf %258, %244 : vector<1x32xf32>
    %266 = arith.mulf %257, %264 : vector<1x32xf32>
    %267 = arith.addf %265, %266 : vector<1x32xf32>
    %268 = math.tanh %267 : vector<1x32xf32>
    %269 = arith.mulf %259, %268 : vector<1x32xf32>
    %270 = vector.extract_strided_slice %269 {offsets = [0, 0], sizes = [1, 16], strides = [1, 1]} : vector<1x32xf32> to vector<1x16xf32>
    %271 = vector.extract_strided_slice %269 {offsets = [0, 16], sizes = [1, 16], strides = [1, 1]} : vector<1x32xf32> to vector<1x16xf32>
    %272 = vector.extract_strided_slice %107 {offsets = [7, 0], sizes = [1, 128], strides = [1, 1]} : vector<8x128xf32> to vector<1x128xf32>
    %cst_58 = arith.constant dense<0.000000e+00> : vector<1x128xf32>
    %273 = tpu.matmul %269, %108, %cst_58 {dimension_numbers = #tpu.dot_dimension_numbers<[1], [0], [0], [1], [0, 0, 1, 1], [], []>} : vector<1x32xf32>, vector<32x128xf32>, vector<1x128xf32> -> vector<1x128xf32>
    %274 = arith.addf %272, %273 : vector<1x128xf32>
    %275 = arith.negf %274 : vector<1x128xf32>
    %276 = math.exp %275 : vector<1x128xf32>
    %cst_59 = arith.constant 1.000000e+00 : f32
    %277 = vector.broadcast %cst_59 : f32 to vector<1x128xf32>
    %278 = arith.addf %277, %276 : vector<1x128xf32>
    %279 = arith.divf %277, %278 : vector<1x128xf32>
    %280 = vector.extract_strided_slice %279 {offsets = [0, 0], sizes = [1, 32], strides = [1, 1]} : vector<1x128xf32> to vector<1x32xf32>
    %281 = vector.extract_strided_slice %279 {offsets = [0, 32], sizes = [1, 32], strides = [1, 1]} : vector<1x128xf32> to vector<1x32xf32>
    %282 = vector.extract_strided_slice %279 {offsets = [0, 64], sizes = [1, 32], strides = [1, 1]} : vector<1x128xf32> to vector<1x32xf32>
    %283 = vector.extract_strided_slice %279 {offsets = [0, 96], sizes = [1, 32], strides = [1, 1]} : vector<1x128xf32> to vector<1x32xf32>
    %cst_60 = arith.constant 2.000000e+00 : f32
    %284 = vector.broadcast %cst_60 : f32 to vector<1x32xf32>
    %285 = arith.mulf %284, %283 : vector<1x32xf32>
    %cst_61 = arith.constant 1.000000e+00 : f32
    %286 = vector.broadcast %cst_61 : f32 to vector<1x32xf32>
    %287 = arith.subf %285, %286 : vector<1x32xf32>
    %288 = arith.mulf %281, %267 : vector<1x32xf32>
    %289 = arith.mulf %280, %287 : vector<1x32xf32>
    %290 = arith.addf %288, %289 : vector<1x32xf32>
    %291 = math.tanh %290 : vector<1x32xf32>
    %292 = arith.mulf %282, %291 : vector<1x32xf32>
    %293 = vector.extract_strided_slice %292 {offsets = [0, 0], sizes = [1, 16], strides = [1, 1]} : vector<1x32xf32> to vector<1x16xf32>
    %294 = vector.extract_strided_slice %292 {offsets = [0, 16], sizes = [1, 16], strides = [1, 1]} : vector<1x32xf32> to vector<1x16xf32>
    %295 = tpu.concatenate %132, %155, %178, %201, %224, %247, %270, %293 in 0 : vector<1x16xf32>, vector<1x16xf32>, vector<1x16xf32>, vector<1x16xf32>, vector<1x16xf32>, vector<1x16xf32>, vector<1x16xf32>, vector<1x16xf32> -> vector<8x16xf32>
    %296 = tpu.concatenate %294, %271, %248, %225, %202, %179, %156, %133 in 0 : vector<1x16xf32>, vector<1x16xf32>, vector<1x16xf32>, vector<1x16xf32>, vector<1x16xf32>, vector<1x16xf32>, vector<1x16xf32>, vector<1x16xf32> -> vector<8x16xf32>
    %297 = tpu.concatenate %295, %296 in 1 : vector<8x16xf32>, vector<8x16xf32> -> vector<8x32xf32>
    %c0_62 = arith.constant 0 : index
    %c0_63 = arith.constant 0 : index
    %298 = vector.load %arg4[%c0_62, %c0_63] : memref<32x11xf32, #tpu.memory_space<vmem>>, vector<32x11xf32>
    %cst_64 = arith.constant dense<0.000000e+00> : vector<8x11xf32>
    %299 = tpu.matmul %297, %298, %cst_64 {dimension_numbers = #tpu.dot_dimension_numbers<[1], [0], [0], [1], [0, 0, 1, 1], [], []>} : vector<8x32xf32>, vector<32x11xf32>, vector<8x11xf32> -> vector<8x11xf32>
    %c0_65 = arith.constant 0 : index
    %c0_66 = arith.constant 0 : index
    %300 = vector.load %arg6[%c0_65, %c0_66] : memref<1x11xf32, #tpu.memory_space<vmem>>, vector<1x11xf32>
    %301 = vector.broadcast %300 : vector<1x11xf32> to vector<8x11xf32>
    %302 = arith.addf %299, %301 : vector<8x11xf32>
    %c0_67 = arith.constant 0 : index
    %c0_68 = arith.constant 0 : index
    %303 = vector.load %arg5[%c0_67, %c0_68] : memref<11x32xf32, #tpu.memory_space<vmem>>, vector<11x32xf32>
    %cst_69 = arith.constant dense<0.000000e+00> : vector<11x8xf32>
    %304 = tpu.matmul %303, %297, %cst_69 {dimension_numbers = #tpu.dot_dimension_numbers<[1], [1], [0], [0], [0, 0, 1, 0], [], []>} : vector<11x32xf32>, vector<8x32xf32>, vector<11x8xf32> -> vector<11x8xf32>
    %c0_70 = arith.constant 0 : index
    %c0_71 = arith.constant 0 : index
    %305 = vector.load %arg7[%c0_70, %c0_71] : memref<11x1xf32, #tpu.memory_space<vmem>>, vector<11x1xf32>
    %306 = vector.broadcast %305 : vector<11x1xf32> to vector<11x8xf32>
    %307 = arith.addf %304, %306 : vector<11x8xf32>
    %c0_72 = arith.constant 0 : index
    %c0_73 = arith.constant 0 : index
    %308 = vector.load %arg8[%c0_72, %c0_73] : memref<11x11xf32, #tpu.memory_space<vmem>>, vector<11x11xf32>
    %c0_74 = arith.constant 0 : index
    %c0_75 = arith.constant 0 : index
    %309 = vector.load %arg9[%c0_74, %c0_75] : memref<11x11xf32, #tpu.memory_space<vmem>>, vector<11x11xf32>
    %310 = tpu.iota {dimensions = array<i32: 0>} : vector<11x1xi32>
    %311 = tpu.iota {dimensions = array<i32: 0>} : vector<11x11xi32>
    %312 = tpu.iota {dimensions = array<i32: 1>} : vector<11x11xi32>
    %313 = tpu.iota {dimensions = array<i32: 1>} : vector<1x11xi32>
    %c9_i32 = arith.constant 9 : i32
    %314 = vector.broadcast %c9_i32 : i32 to vector<11x1xi32>
    %315 = arith.cmpi eq, %310, %314 : vector<11x1xi32>
    %cst_76 = arith.constant 0.000000e+00 : f32
    %cst_77 = arith.constant -1.000000e+04 : f32
    %316 = vector.broadcast %cst_76 : f32 to vector<11x1xf32>
    %317 = vector.broadcast %cst_77 : f32 to vector<11x1xf32>
    %318 = arith.select %315, %316, %317 : vector<11x1xi1>, vector<11x1xf32>
    %319 = vector.broadcast %318 : vector<11x1xf32> to vector<11x11xf32>
    %320 = arith.addf %308, %319 : vector<11x11xf32>
    %cst_78 = arith.constant dense<0xFF800000> : vector<11xf32>
    %321 = vector.multi_reduction <maximumf>, %320, %cst_78 [0] : vector<11x11xf32> to vector<11xf32>
    %322 = vector.shape_cast %321 : vector<11xf32> to vector<1x11xf32>
    %323 = vector.broadcast %322 : vector<1x11xf32> to vector<11x11xf32>
    %324 = arith.cmpf oeq, %320, %323 : vector<11x11xf32>
    %c11_i32 = arith.constant 11 : i32
    %325 = vector.broadcast %c11_i32 : i32 to vector<11x11xi32>
    %326 = arith.select %324, %311, %325 : vector<11x11xi1>, vector<11x11xi32>
    %cst_79 = arith.constant dense<2147483647> : vector<11xi32>
    %327 = vector.multi_reduction <minsi>, %326, %cst_79 [0] : vector<11x11xi32> to vector<11xi32>
    %328 = vector.shape_cast %327 : vector<11xi32> to vector<1x11xi32>
    %329 = vector.extract_strided_slice %302 {offsets = [0, 0], sizes = [1, 11], strides = [1, 1]} : vector<8x11xf32> to vector<1x11xf32>
    %330 = arith.addf %322, %329 : vector<1x11xf32>
    %331 = vector.broadcast %330 : vector<1x11xf32> to vector<11x11xf32>
    %332 = arith.addf %309, %331 : vector<11x11xf32>
    %cst_80 = arith.constant dense<0xFF800000> : vector<11xf32>
    %333 = vector.multi_reduction <maximumf>, %332, %cst_80 [1] : vector<11x11xf32> to vector<11xf32>
    %334 = vector.shape_cast %333 : vector<11xf32> to vector<11x1xf32>
    %335 = vector.broadcast %334 : vector<11x1xf32> to vector<11x11xf32>
    %336 = arith.cmpf oeq, %332, %335 : vector<11x11xf32>
    %c11_i32_81 = arith.constant 11 : i32
    %337 = vector.broadcast %c11_i32_81 : i32 to vector<11x11xi32>
    %338 = arith.select %336, %312, %337 : vector<11x11xi1>, vector<11x11xi32>
    %cst_82 = arith.constant dense<2147483647> : vector<11xi32>
    %339 = vector.multi_reduction <minsi>, %338, %cst_82 [1] : vector<11x11xi32> to vector<11xi32>
    %340 = vector.shape_cast %339 : vector<11xi32> to vector<11x1xi32>
    %341 = vector.extract_strided_slice %307 {offsets = [0, 1], sizes = [11, 1], strides = [1, 1]} : vector<11x8xf32> to vector<11x1xf32>
    %342 = arith.addf %334, %341 : vector<11x1xf32>
    %343 = vector.broadcast %342 : vector<11x1xf32> to vector<11x11xf32>
    %344 = arith.addf %308, %343 : vector<11x11xf32>
    %cst_83 = arith.constant dense<0xFF800000> : vector<11xf32>
    %345 = vector.multi_reduction <maximumf>, %344, %cst_83 [0] : vector<11x11xf32> to vector<11xf32>
    %346 = vector.shape_cast %345 : vector<11xf32> to vector<1x11xf32>
    %347 = vector.broadcast %346 : vector<1x11xf32> to vector<11x11xf32>
    %348 = arith.cmpf oeq, %344, %347 : vector<11x11xf32>
    %c11_i32_84 = arith.constant 11 : i32
    %349 = vector.broadcast %c11_i32_84 : i32 to vector<11x11xi32>
    %350 = arith.select %348, %311, %349 : vector<11x11xi1>, vector<11x11xi32>
    %cst_85 = arith.constant dense<2147483647> : vector<11xi32>
    %351 = vector.multi_reduction <minsi>, %350, %cst_85 [0] : vector<11x11xi32> to vector<11xi32>
    %352 = vector.shape_cast %351 : vector<11xi32> to vector<1x11xi32>
    %353 = vector.extract_strided_slice %302 {offsets = [2, 0], sizes = [1, 11], strides = [1, 1]} : vector<8x11xf32> to vector<1x11xf32>
    %354 = arith.addf %346, %353 : vector<1x11xf32>
    %355 = vector.broadcast %354 : vector<1x11xf32> to vector<11x11xf32>
    %356 = arith.addf %309, %355 : vector<11x11xf32>
    %cst_86 = arith.constant dense<0xFF800000> : vector<11xf32>
    %357 = vector.multi_reduction <maximumf>, %356, %cst_86 [1] : vector<11x11xf32> to vector<11xf32>
    %358 = vector.shape_cast %357 : vector<11xf32> to vector<11x1xf32>
    %359 = vector.broadcast %358 : vector<11x1xf32> to vector<11x11xf32>
    %360 = arith.cmpf oeq, %356, %359 : vector<11x11xf32>
    %c11_i32_87 = arith.constant 11 : i32
    %361 = vector.broadcast %c11_i32_87 : i32 to vector<11x11xi32>
    %362 = arith.select %360, %312, %361 : vector<11x11xi1>, vector<11x11xi32>
    %cst_88 = arith.constant dense<2147483647> : vector<11xi32>
    %363 = vector.multi_reduction <minsi>, %362, %cst_88 [1] : vector<11x11xi32> to vector<11xi32>
    %364 = vector.shape_cast %363 : vector<11xi32> to vector<11x1xi32>
    %365 = vector.extract_strided_slice %307 {offsets = [0, 3], sizes = [11, 1], strides = [1, 1]} : vector<11x8xf32> to vector<11x1xf32>
    %366 = arith.addf %358, %365 : vector<11x1xf32>
    %367 = vector.broadcast %366 : vector<11x1xf32> to vector<11x11xf32>
    %368 = arith.addf %308, %367 : vector<11x11xf32>
    %cst_89 = arith.constant dense<0xFF800000> : vector<11xf32>
    %369 = vector.multi_reduction <maximumf>, %368, %cst_89 [0] : vector<11x11xf32> to vector<11xf32>
    %370 = vector.shape_cast %369 : vector<11xf32> to vector<1x11xf32>
    %371 = vector.broadcast %370 : vector<1x11xf32> to vector<11x11xf32>
    %372 = arith.cmpf oeq, %368, %371 : vector<11x11xf32>
    %c11_i32_90 = arith.constant 11 : i32
    %373 = vector.broadcast %c11_i32_90 : i32 to vector<11x11xi32>
    %374 = arith.select %372, %311, %373 : vector<11x11xi1>, vector<11x11xi32>
    %cst_91 = arith.constant dense<2147483647> : vector<11xi32>
    %375 = vector.multi_reduction <minsi>, %374, %cst_91 [0] : vector<11x11xi32> to vector<11xi32>
    %376 = vector.shape_cast %375 : vector<11xi32> to vector<1x11xi32>
    %377 = vector.extract_strided_slice %302 {offsets = [4, 0], sizes = [1, 11], strides = [1, 1]} : vector<8x11xf32> to vector<1x11xf32>
    %378 = arith.addf %370, %377 : vector<1x11xf32>
    %379 = vector.broadcast %378 : vector<1x11xf32> to vector<11x11xf32>
    %380 = arith.addf %309, %379 : vector<11x11xf32>
    %cst_92 = arith.constant dense<0xFF800000> : vector<11xf32>
    %381 = vector.multi_reduction <maximumf>, %380, %cst_92 [1] : vector<11x11xf32> to vector<11xf32>
    %382 = vector.shape_cast %381 : vector<11xf32> to vector<11x1xf32>
    %383 = vector.broadcast %382 : vector<11x1xf32> to vector<11x11xf32>
    %384 = arith.cmpf oeq, %380, %383 : vector<11x11xf32>
    %c11_i32_93 = arith.constant 11 : i32
    %385 = vector.broadcast %c11_i32_93 : i32 to vector<11x11xi32>
    %386 = arith.select %384, %312, %385 : vector<11x11xi1>, vector<11x11xi32>
    %cst_94 = arith.constant dense<2147483647> : vector<11xi32>
    %387 = vector.multi_reduction <minsi>, %386, %cst_94 [1] : vector<11x11xi32> to vector<11xi32>
    %388 = vector.shape_cast %387 : vector<11xi32> to vector<11x1xi32>
    %389 = vector.extract_strided_slice %307 {offsets = [0, 5], sizes = [11, 1], strides = [1, 1]} : vector<11x8xf32> to vector<11x1xf32>
    %390 = arith.addf %382, %389 : vector<11x1xf32>
    %391 = vector.broadcast %390 : vector<11x1xf32> to vector<11x11xf32>
    %392 = arith.addf %308, %391 : vector<11x11xf32>
    %cst_95 = arith.constant dense<0xFF800000> : vector<11xf32>
    %393 = vector.multi_reduction <maximumf>, %392, %cst_95 [0] : vector<11x11xf32> to vector<11xf32>
    %394 = vector.shape_cast %393 : vector<11xf32> to vector<1x11xf32>
    %395 = vector.broadcast %394 : vector<1x11xf32> to vector<11x11xf32>
    %396 = arith.cmpf oeq, %392, %395 : vector<11x11xf32>
    %c11_i32_96 = arith.constant 11 : i32
    %397 = vector.broadcast %c11_i32_96 : i32 to vector<11x11xi32>
    %398 = arith.select %396, %311, %397 : vector<11x11xi1>, vector<11x11xi32>
    %cst_97 = arith.constant dense<2147483647> : vector<11xi32>
    %399 = vector.multi_reduction <minsi>, %398, %cst_97 [0] : vector<11x11xi32> to vector<11xi32>
    %400 = vector.shape_cast %399 : vector<11xi32> to vector<1x11xi32>
    %401 = vector.extract_strided_slice %302 {offsets = [6, 0], sizes = [1, 11], strides = [1, 1]} : vector<8x11xf32> to vector<1x11xf32>
    %402 = arith.addf %394, %401 : vector<1x11xf32>
    %403 = vector.broadcast %402 : vector<1x11xf32> to vector<11x11xf32>
    %404 = arith.addf %309, %403 : vector<11x11xf32>
    %cst_98 = arith.constant dense<0xFF800000> : vector<11xf32>
    %405 = vector.multi_reduction <maximumf>, %404, %cst_98 [1] : vector<11x11xf32> to vector<11xf32>
    %406 = vector.shape_cast %405 : vector<11xf32> to vector<11x1xf32>
    %407 = vector.broadcast %406 : vector<11x1xf32> to vector<11x11xf32>
    %408 = arith.cmpf oeq, %404, %407 : vector<11x11xf32>
    %c11_i32_99 = arith.constant 11 : i32
    %409 = vector.broadcast %c11_i32_99 : i32 to vector<11x11xi32>
    %410 = arith.select %408, %312, %409 : vector<11x11xi1>, vector<11x11xi32>
    %cst_100 = arith.constant dense<2147483647> : vector<11xi32>
    %411 = vector.multi_reduction <minsi>, %410, %cst_100 [1] : vector<11x11xi32> to vector<11xi32>
    %412 = vector.shape_cast %411 : vector<11xi32> to vector<11x1xi32>
    %413 = vector.extract_strided_slice %307 {offsets = [0, 7], sizes = [11, 1], strides = [1, 1]} : vector<11x8xf32> to vector<11x1xf32>
    %414 = arith.addf %406, %413 : vector<11x1xf32>
    %415 = vector.extract_strided_slice %308 {offsets = [0, 10], sizes = [11, 1], strides = [1, 1]} : vector<11x11xf32> to vector<11x1xf32>
    %416 = arith.addf %414, %415 : vector<11x1xf32>
    %cst_101 = arith.constant dense<0xFF800000> : vector<1xf32>
    %417 = vector.multi_reduction <maximumf>, %416, %cst_101 [0] : vector<11x1xf32> to vector<1xf32>
    %418 = vector.shape_cast %417 : vector<1xf32> to vector<1x1xf32>
    %419 = vector.broadcast %418 : vector<1x1xf32> to vector<11x1xf32>
    %420 = arith.cmpf oeq, %416, %419 : vector<11x1xf32>
    %c11_i32_102 = arith.constant 11 : i32
    %421 = vector.broadcast %c11_i32_102 : i32 to vector<11x1xi32>
    %422 = arith.select %420, %310, %421 : vector<11x1xi1>, vector<11x1xi32>
    %cst_103 = arith.constant dense<2147483647> : vector<1xi32>
    %423 = vector.multi_reduction <minsi>, %422, %cst_103 [0] : vector<11x1xi32> to vector<1xi32>
    %424 = vector.shape_cast %423 : vector<1xi32> to vector<1x1xi32>
    %425 = tpu.iota {dimensions = array<i32: 1>} : vector<1x128xi32>
    %c7_i32 = arith.constant 7 : i32
    %426 = vector.broadcast %c7_i32 : i32 to vector<1x128xi32>
    %427 = arith.cmpi eq, %425, %426 : vector<1x128xi32>
    %c0_i32 = arith.constant 0 : i32
    %428 = vector.shape_cast %424 : vector<1x1xi32> to vector<1x1xi32>
    %429 = vector.broadcast %428 : vector<1x1xi32> to vector<1x128xi32>
    %430 = vector.broadcast %c0_i32 : i32 to vector<1x128xi32>
    %431 = arith.select %427, %429, %430 : vector<1x128xi1>, vector<1x128xi32>
    %432 = vector.broadcast %424 : vector<1x1xi32> to vector<11x1xi32>
    %433 = arith.cmpi eq, %310, %432 : vector<11x1xi32>
    %c11_i32_104 = arith.constant 11 : i32
    %434 = vector.broadcast %c11_i32_104 : i32 to vector<11x1xi32>
    %435 = arith.select %433, %412, %434 : vector<11x1xi1>, vector<11x1xi32>
    %cst_105 = arith.constant dense<2147483647> : vector<1xi32>
    %436 = vector.multi_reduction <minsi>, %435, %cst_105 [0] : vector<11x1xi32> to vector<1xi32>
    %437 = vector.shape_cast %436 : vector<1xi32> to vector<1x1xi32>
    %c6_i32 = arith.constant 6 : i32
    %438 = vector.broadcast %c6_i32 : i32 to vector<1x128xi32>
    %439 = arith.cmpi eq, %425, %438 : vector<1x128xi32>
    %440 = vector.shape_cast %437 : vector<1x1xi32> to vector<1x1xi32>
    %441 = vector.broadcast %440 : vector<1x1xi32> to vector<1x128xi32>
    %442 = arith.select %439, %441, %431 : vector<1x128xi1>, vector<1x128xi32>
    %443 = vector.broadcast %437 : vector<1x1xi32> to vector<1x11xi32>
    %444 = arith.cmpi eq, %313, %443 : vector<1x11xi32>
    %c11_i32_106 = arith.constant 11 : i32
    %445 = vector.broadcast %c11_i32_106 : i32 to vector<1x11xi32>
    %446 = arith.select %444, %400, %445 : vector<1x11xi1>, vector<1x11xi32>
    %cst_107 = arith.constant dense<2147483647> : vector<1xi32>
    %447 = vector.multi_reduction <minsi>, %446, %cst_107 [1] : vector<1x11xi32> to vector<1xi32>
    %448 = vector.shape_cast %447 : vector<1xi32> to vector<1x1xi32>
    %c5_i32 = arith.constant 5 : i32
    %449 = vector.broadcast %c5_i32 : i32 to vector<1x128xi32>
    %450 = arith.cmpi eq, %425, %449 : vector<1x128xi32>
    %451 = vector.shape_cast %448 : vector<1x1xi32> to vector<1x1xi32>
    %452 = vector.broadcast %451 : vector<1x1xi32> to vector<1x128xi32>
    %453 = arith.select %450, %452, %442 : vector<1x128xi1>, vector<1x128xi32>
    %454 = vector.broadcast %448 : vector<1x1xi32> to vector<11x1xi32>
    %455 = arith.cmpi eq, %310, %454 : vector<11x1xi32>
    %c11_i32_108 = arith.constant 11 : i32
    %456 = vector.broadcast %c11_i32_108 : i32 to vector<11x1xi32>
    %457 = arith.select %455, %388, %456 : vector<11x1xi1>, vector<11x1xi32>
    %cst_109 = arith.constant dense<2147483647> : vector<1xi32>
    %458 = vector.multi_reduction <minsi>, %457, %cst_109 [0] : vector<11x1xi32> to vector<1xi32>
    %459 = vector.shape_cast %458 : vector<1xi32> to vector<1x1xi32>
    %c4_i32 = arith.constant 4 : i32
    %460 = vector.broadcast %c4_i32 : i32 to vector<1x128xi32>
    %461 = arith.cmpi eq, %425, %460 : vector<1x128xi32>
    %462 = vector.shape_cast %459 : vector<1x1xi32> to vector<1x1xi32>
    %463 = vector.broadcast %462 : vector<1x1xi32> to vector<1x128xi32>
    %464 = arith.select %461, %463, %453 : vector<1x128xi1>, vector<1x128xi32>
    %465 = vector.broadcast %459 : vector<1x1xi32> to vector<1x11xi32>
    %466 = arith.cmpi eq, %313, %465 : vector<1x11xi32>
    %c11_i32_110 = arith.constant 11 : i32
    %467 = vector.broadcast %c11_i32_110 : i32 to vector<1x11xi32>
    %468 = arith.select %466, %376, %467 : vector<1x11xi1>, vector<1x11xi32>
    %cst_111 = arith.constant dense<2147483647> : vector<1xi32>
    %469 = vector.multi_reduction <minsi>, %468, %cst_111 [1] : vector<1x11xi32> to vector<1xi32>
    %470 = vector.shape_cast %469 : vector<1xi32> to vector<1x1xi32>
    %c3_i32 = arith.constant 3 : i32
    %471 = vector.broadcast %c3_i32 : i32 to vector<1x128xi32>
    %472 = arith.cmpi eq, %425, %471 : vector<1x128xi32>
    %473 = vector.shape_cast %470 : vector<1x1xi32> to vector<1x1xi32>
    %474 = vector.broadcast %473 : vector<1x1xi32> to vector<1x128xi32>
    %475 = arith.select %472, %474, %464 : vector<1x128xi1>, vector<1x128xi32>
    %476 = vector.broadcast %470 : vector<1x1xi32> to vector<11x1xi32>
    %477 = arith.cmpi eq, %310, %476 : vector<11x1xi32>
    %c11_i32_112 = arith.constant 11 : i32
    %478 = vector.broadcast %c11_i32_112 : i32 to vector<11x1xi32>
    %479 = arith.select %477, %364, %478 : vector<11x1xi1>, vector<11x1xi32>
    %cst_113 = arith.constant dense<2147483647> : vector<1xi32>
    %480 = vector.multi_reduction <minsi>, %479, %cst_113 [0] : vector<11x1xi32> to vector<1xi32>
    %481 = vector.shape_cast %480 : vector<1xi32> to vector<1x1xi32>
    %c2_i32 = arith.constant 2 : i32
    %482 = vector.broadcast %c2_i32 : i32 to vector<1x128xi32>
    %483 = arith.cmpi eq, %425, %482 : vector<1x128xi32>
    %484 = vector.shape_cast %481 : vector<1x1xi32> to vector<1x1xi32>
    %485 = vector.broadcast %484 : vector<1x1xi32> to vector<1x128xi32>
    %486 = arith.select %483, %485, %475 : vector<1x128xi1>, vector<1x128xi32>
    %487 = vector.broadcast %481 : vector<1x1xi32> to vector<1x11xi32>
    %488 = arith.cmpi eq, %313, %487 : vector<1x11xi32>
    %c11_i32_114 = arith.constant 11 : i32
    %489 = vector.broadcast %c11_i32_114 : i32 to vector<1x11xi32>
    %490 = arith.select %488, %352, %489 : vector<1x11xi1>, vector<1x11xi32>
    %cst_115 = arith.constant dense<2147483647> : vector<1xi32>
    %491 = vector.multi_reduction <minsi>, %490, %cst_115 [1] : vector<1x11xi32> to vector<1xi32>
    %492 = vector.shape_cast %491 : vector<1xi32> to vector<1x1xi32>
    %c1_i32 = arith.constant 1 : i32
    %493 = vector.broadcast %c1_i32 : i32 to vector<1x128xi32>
    %494 = arith.cmpi eq, %425, %493 : vector<1x128xi32>
    %495 = vector.shape_cast %492 : vector<1x1xi32> to vector<1x1xi32>
    %496 = vector.broadcast %495 : vector<1x1xi32> to vector<1x128xi32>
    %497 = arith.select %494, %496, %486 : vector<1x128xi1>, vector<1x128xi32>
    %498 = vector.broadcast %492 : vector<1x1xi32> to vector<11x1xi32>
    %499 = arith.cmpi eq, %310, %498 : vector<11x1xi32>
    %c11_i32_116 = arith.constant 11 : i32
    %500 = vector.broadcast %c11_i32_116 : i32 to vector<11x1xi32>
    %501 = arith.select %499, %340, %500 : vector<11x1xi1>, vector<11x1xi32>
    %cst_117 = arith.constant dense<2147483647> : vector<1xi32>
    %502 = vector.multi_reduction <minsi>, %501, %cst_117 [0] : vector<11x1xi32> to vector<1xi32>
    %503 = vector.shape_cast %502 : vector<1xi32> to vector<1x1xi32>
    %c0_i32_118 = arith.constant 0 : i32
    %504 = vector.broadcast %c0_i32_118 : i32 to vector<1x128xi32>
    %505 = arith.cmpi eq, %425, %504 : vector<1x128xi32>
    %506 = vector.shape_cast %503 : vector<1x1xi32> to vector<1x1xi32>
    %507 = vector.broadcast %506 : vector<1x1xi32> to vector<1x128xi32>
    %508 = arith.select %505, %507, %497 : vector<1x128xi1>, vector<1x128xi32>
    %509 = vector.broadcast %503 : vector<1x1xi32> to vector<1x11xi32>
    %510 = arith.cmpi eq, %313, %509 : vector<1x11xi32>
    %c11_i32_119 = arith.constant 11 : i32
    %511 = vector.broadcast %c11_i32_119 : i32 to vector<1x11xi32>
    %512 = arith.select %510, %328, %511 : vector<1x11xi1>, vector<1x11xi32>
    %cst_120 = arith.constant dense<2147483647> : vector<1xi32>
    %513 = vector.multi_reduction <minsi>, %512, %cst_120 [1] : vector<1x11xi32> to vector<1xi32>
    %514 = vector.shape_cast %513 : vector<1xi32> to vector<1x1xi32>
    %c8_i32 = arith.constant 8 : i32
    %515 = vector.broadcast %c8_i32 : i32 to vector<1x128xi32>
    %516 = arith.cmpi eq, %425, %515 : vector<1x128xi32>
    %517 = vector.shape_cast %514 : vector<1x1xi32> to vector<1x1xi32>
    %518 = vector.broadcast %517 : vector<1x1xi32> to vector<1x128xi32>
    %519 = arith.select %516, %518, %508 : vector<1x128xi1>, vector<1x128xi32>
    %520 = arith.sitofp %519 : vector<1x128xi32> to vector<1x128xf32>
    %c9_i32_121 = arith.constant 9 : i32
    %521 = vector.broadcast %c9_i32_121 : i32 to vector<1x128xi32>
    %522 = arith.cmpi eq, %425, %521 : vector<1x128xi32>
    %523 = vector.shape_cast %418 : vector<1x1xf32> to vector<1x1xf32>
    %524 = vector.broadcast %523 : vector<1x1xf32> to vector<1x128xf32>
    %525 = arith.select %522, %524, %520 : vector<1x128xi1>, vector<1x128xf32>
    %c0_122 = arith.constant 0 : index
    %c0_123 = arith.constant 0 : index
    %526 = vector.load %arg10[%c0_122, %c0_123] : memref<1x128xf32, #tpu.memory_space<vmem>>, vector<1x128xf32>
    tpu.vector_store %arg10[%c0_122, %c0_123], %525 {strides = array<i32>} : memref<1x128xf32, #tpu.memory_space<vmem>>, vector<1x128xf32>,
    return
  }
}

</mosaic_0001>

<bundles_post_ra>
// kernel: tpu_custom_call.1
= control target key start
LH: loop header
LB: loop body
LE: loop exit
PB: predicated region body
PF: predicated region fallthrough
CT: control target
= control target key end

     0   :  { %15 = vsyncpa [#allocation5], 0  ;;  %s3140_s0 = inlined_call_operand.hbm [shape: s32[8], index: 0, kind: input, shape index: {}]   ;;  %s3141_s1 = inlined_call_operand.vmem [shape: f32[41,128], index: 1, kind: input, shape index: {}]   ;;  %s3142_s2 = inlined_call_operand.hbm [shape: f32[32,128], index: 2, kind: input, shape index: {}]   ;;  %s3143_s3 = inlined_call_operand.hbm [shape: f32[2,32], index: 3, kind: input, shape index: {}]   ;;  %s3144_s4 = inlined_call_operand.vmem [shape: f32[32,11], index: 4, kind: input, shape index: {}]   ;;  %s3145_s5 = inlined_call_operand.vmem [shape: f32[11,32], index: 5, kind: input, shape index: {}]   ;;  %s3146_s6 = inlined_call_operand.vmem [shape: f32[1,11], index: 6, kind: input, shape index: {}]   ;;  %s3147_s7 = inlined_call_operand.vmem [shape: f32[11,1], index: 7, kind: input, shape index: {}]   ;;  %s3148_s8 = inlined_call_operand.hbm [shape: f32[11,11], index: 8, kind: input, shape index: {}]   ;;  %s3149_s9 = inlined_call_operand.vmem [shape: f32[11,11], index: 9, kind: input, shape index: {}]   ;;  %s3150_s10 = inlined_call_operand.hbm [shape: f32[1,128], index: 10, kind: output, shape index: {}]  }
   0x1   :  { %16 = vsyncpa [#allocation3], 0 }
   0x2   :  { %17 = vsyncpa [#allocation8], 0 }
   0x3   :  { %18 = vsyncpa [#allocation4], 0  ;;  %s2389_s13 = smov [#allocation7]   ;;  %s2390_s15 = smov [#allocation6]  }
   0x4   :  { %s47_s14 = sshll.u32 %s2389_s13, 4  ;;  %s34_s16 = sshll.u32 %s2390_s15, 4  ;;  %s48_s14 = int_to_ptr.vmem [resolvable:$true] %s47_s14  ;;  %s35_s16 = int_to_ptr.vmem [resolvable:$true] %s34_s16 }
   0x5   :  { %s2283_s19 = scalar_lea.hbm %s3143_s3, 32 }
   0x6   :  { %p2284_p0 = scmp.ne.s32.totalorder %s3143_s3, %s2283_s19  ;;  %p2287_p1 = scmp.lt.u32.totalorder %s2283_s19, %s3143_s3 }
   0x8   :  { %p2289_p2 = pnand %p2287_p1, %p2284_p0 }
   0xa   :  { %2292 = shalt.err (!%p2289_p2)
}
   0xb   :  { %s2293_s24 = scalar_lea.vmem %s48_s14, 32  ;;  %p2298_p4 = scmp.lt.s32.totalorder %s48_s14, %s48_s14 }
   0xc   :  { %p2294_p3 = scmp.ne.s32.totalorder %s48_s14, %s2293_s24  ;;  %p2299_p5 = scmp.lt.s32.totalorder %s2293_s24, %s2293_s24 }
   0xe   :  { %p2300_p6 = por %p2299_p5, %p2298_p4 }
  0x10   :  { %p2301_p7 = pnand %p2300_p6, %p2294_p3 }
  0x12   :  { %2304 = shalt.err (!%p2301_p7)
}
  0x13   :  { %50 = dma.hbm_to_vmem [thread:$0]  %s3143_s3, 32, %s48_s14, [#allocation8]  }
  0x14   :  { %s2305_s29 = scalar_lea.hbm %s3140_s0, 16 }
  0x15   :  { %p2306_p8 = scmp.ne.s32.totalorder %s3140_s0, %s2305_s29  ;;  %p2309_p9 = scmp.lt.u32.totalorder %s2305_s29, %s3140_s0 }
  0x17   :  { %p2311_p10 = pnand %p2309_p9, %p2306_p8 }
  0x19   :  { %2314 = shalt.err (!%p2311_p10)
}
  0x1a   :  { %s2391_s15 = smov [#allocation2]   ;;  %s2315_s19 = scalar_lea.hbm %s3142_s2, 512 }
  0x1b   :  { %26 = dma.hbm_to_smem %s3140_s0, 16, %s2391_s15, [#allocation5]  }
  0x1c   :  { %p2316_p11 = scmp.ne.s32.totalorder %s3142_s2, %s2315_s19  ;;  %p2319_p12 = scmp.lt.u32.totalorder %s2315_s19, %s3142_s2 }
  0x1e   :  { %p2321_p13 = pnand %p2319_p12, %p2316_p11 }
  0x20   :  { %2324 = shalt.err (!%p2321_p13)
}
  0x21   :  { %s2325_s24 = scalar_lea.vmem %s35_s16, 512  ;;  %p2330_p1 = scmp.lt.s32.totalorder %s35_s16, %s35_s16 }
  0x22   :  { %p2326_p0 = scmp.ne.s32.totalorder %s35_s16, %s2325_s24  ;;  %p2331_p2 = scmp.lt.s32.totalorder %s2325_s24, %s2325_s24 }
  0x24   :  { %p2332_p3 = por %p2331_p2, %p2330_p1 }
  0x26   :  { %p2333_p4 = pnand %p2332_p3, %p2326_p0 }
  0x28   :  { %2336 = shalt.err (!%p2333_p4)
}
  0x29   :  { %s2392_s0 = smov 128   ;;  %s2393_s25 = smov 8  }
  0x2a   :  { %40 = dma.hbm_to_vmem [thread:$0]  %s3142_s2, 512, %s35_s16, [#allocation3], %s2392_s0, %s2392_s0, %s2393_s25  }
  0x2b   :  { %s2394_s28 = smov [#allocation9]   ;;  %s2337_s12 = scalar_lea.hbm %s3148_s8, 256 }
  0x2c   :  { %s64_s29 = sshll.u32 %s2394_s28, 4  ;;  %p2338_p5 = scmp.ne.s32.totalorder %s3148_s8, %s2337_s12  ;;  %s65_s29 = int_to_ptr.vmem [resolvable:$true] %s64_s29 }
  0x2d   :  { %p2341_p6 = scmp.lt.u32.totalorder %s2337_s12, %s3148_s8 }
  0x2f   :  { %p2343_p7 = pnand %p2341_p6, %p2338_p5 }
  0x31   :  { %2346 = shalt.err (!%p2343_p7)
}
  0x32   :  { %s2347_s3 = scalar_lea.vmem %s65_s29, 256  ;;  %p2352_p9 = scmp.lt.s32.totalorder %s65_s29, %s65_s29 }
  0x33   :  { %p2348_p8 = scmp.ne.s32.totalorder %s65_s29, %s2347_s3  ;;  %p2353_p10 = scmp.lt.s32.totalorder %s2347_s3, %s2347_s3 }
  0x35   :  { %p2354_p11 = por %p2353_p10, %p2352_p9 }
  0x37   :  { %p2355_p12 = pnand %p2354_p11, %p2348_p8 }
  0x39   :  { %2358 = shalt.err (!%p2355_p12)
}
  0x3a   :  { %70 = dma.hbm_to_vmem [thread:$0]  %s3148_s8, 256, %s65_s29, [#allocation8], %s2392_s0, %s2392_s0, %s2393_s25  }
  0x3b   :  { %2381 = dma.done.wait [#allocation5], 16  }
  0x3c   :  { %2382 = vsyncadd [#allocation5], 4294967280 }
  0x3d   :  { %2383 = dma.done.wait [#allocation3], 512  }
  0x3e   :  { %2384 = vsyncadd [#allocation3], 4294966784 }
  0x3f   :  { %2385 = dma.done.wait [#allocation8], 288  }
  0x40   :  { %2386 = vsyncadd [#allocation8], 4294967008 }
  0x41   :  { %85 = sfence }
  0x42   :  { %v183_v0 = vld [vmem:[%s3141_s1] sm:$0xff]  ;;  %v184_v1 = vld [vmem:[%s3141_s1 + $0x8] sm:$0xff]  ;;  %v86_v3 = vlaneseq  ;;  %s2518_s22 = sld [smem:[#allocation2]]  ;;  %v2395_v4 = vmov 0.0|0.0   ;;  %v185_v7 = vld [vmem:[%s3141_s1 + $0x10] sm:$0xff]  ;;  %s2528_s25 = sld [smem:[#allocation2 + $0x7]] }
  0x43   :  { %v266_v2 = vld [vmem:[#allocation6] sm:$0xff]  ;;  %2143 = vmatprep.subr.bf16.mxu0 %v2395_v4  ;;  %v2144_v5 = vpack.c.bf16 %v184_v1, %v183_v0  ;;  %2153 = vmatprep.subr.bf16.mxu1 %v2395_v4  ;;  %v267_v6 = vld [vmem:[#allocation6 + $0x8] sm:$0xff]  ;;  %v186_v8 = vld [vmem:[%s3141_s1 + $0x18] sm:$0xff]  ;;  %s2532_s26 = sld [smem:[#allocation2 + $0x1]]  ;;  %s2537_s27 = sld [smem:[#allocation2 + $0x6]]  ;;  %vm3151_vm0 = vcmask 1040384  }
  0x44   :  { %v2530_v9 = vpack.c.bf16 %v267_v6, %v266_v2  ;;  %v268_v10 = vld [vmem:[#allocation6 + $0x10] sm:$0xff]  ;;  %v269_v11 = vld [vmem:[#allocation6 + $0x18] sm:$0xff]  ;;  %v2147_v12 = vpack.c.bf16 %v186_v8, %v185_v7  ;;  %v2535_v13 = vand.u32 127, %v86_v3  ;;  %s2539_s28 = sld [smem:[#allocation2 + $0x2]]  ;;  %s2545_s29 = sld [smem:[#allocation2 + $0x5]]  ;;  %v187_v15 = vld [vmem:[%s3141_s1 + $0x20] sm:$0xff] }
  0x45   :  { %2145 = vmatpush3.bf16.msra.mxu0 %v2144_v5  ;;  %v2543_v14 = vpack.c.bf16 %v269_v11, %v268_v10  ;;  %v188_v16 = vld [vmem:[%s3141_s1 + $0x28] sm:$0x1]  ;;  %s2554_s15 = sld [smem:[#allocation2 + $0x3]]  ;;  %vm3154_vm1 = vmmov 0   ;;  %v2397_v18 = vmov 0.0   ;;  %s2561_s17 = sld [smem:[#allocation2 + $0x4]] }
  0x46   :  { %2146 = vmatprep.subr.bf16.mxu0 %v2395_v4  ;;  %2155 = vmatpush3.bf16.msra.mxu1 %v2530_v9  ;;  %v2150_v20 = vpack.c.bf16 %v188_v16, %v187_v15  ;;  %vm96_vm3 = vcmp.eq.s32.totalorder %v2535_v13, 40  ;;  %vm2398_vm4 = vmmov 1   ;;  %v270_v26 = vld [vmem:[#allocation7] sm:$0x1]  ;;  %vm3153_vm6 = vcmask 261120   ;;  %s2399_s21 = smov 32  }
  0x47   :  { %2156 = vmatprep.subr.bf16.mxu1 %v2395_v4  ;;  %2047 = vmatprep.mubr.msk.f32.mxu1 %vm3154_vm1, %v2397_v18  ;;  %vm2576_vm5 = vmpackc.low %vm3151_vm0, %vm2398_vm4  ;;  %v271_v7 = vld [vmem:[#allocation7 + $0x1] sm:$0x1] }
  0x48   :  { %v91_v17 = vstv %s2518_s22  ;;  %2036 = vmatprep.mubr.msk.f32.mxu0 %vm3154_vm1, %v2397_v18  ;;  %s160_s18 = sadd.s32 20, %s2518_s22  ;;  %s90_s1 = sadd.s32 20, %s2528_s25  ;;  %v161_v21 = vstv %s2528_s25 }
  0x49   :  { %2148 = vmatpush3.bf16.msra.mxu0 %v2147_v12  ;;  %vm2566_vm2 = vcmp.eq.s32.totalorder %v2535_v13, %v91_v17  ;;  %v163_v22 = vstv %s160_s18  ;;  %v93_v23 = vstv %s90_s1  ;;  %v103_v24 = vstv %s2532_s26  ;;  %s102_s3 = sadd.s32 20, %s2537_s27  ;;  %s151_s20 = sadd.s32 20, %s2532_s26 }
  0x4a   :  { %2149 = vmatprep.subr.bf16.mxu0 %v2395_v4  ;;  %2158 = vmatpush3.bf16.msra.mxu1 %v2543_v14  ;;  %vm94_vm7 = vcmp.eq.s32.totalorder %v2535_v13, %v93_v23  ;;  %vm2583_vm8 = vcmp.eq.s32.totalorder %v2535_v13, %v103_v24  ;;  %v114_v28 = vstv %s2539_s28  ;;  %v105_v29 = vstv %s102_s3  ;;  %s113_s2 = sadd.s32 20, %s2545_s29  ;;  %s142_s14 = sadd.s32 20, %s2539_s28 }
  0x4b   :  { %2159 = vmatprep.subr.bf16.mxu1 %v2395_v4  ;;  %vm95_vm9 = vmor %vm2566_vm2, %vm94_vm7  ;;  %vm2593_vm10 = vcmp.eq.s32.totalorder %v2535_v13, %v161_v21  ;;  %vm164_vm11 = vcmp.eq.s32.totalorder %v2535_v13, %v163_v22  ;;  %vm106_vm13 = vcmp.eq.s32.totalorder %v2535_v13, %v105_v29  ;;  %vm2602_vm14 = vcmp.eq.s32.totalorder %v2535_v13, %v114_v28  ;;  %s133_s16 = sadd.s32 20, %s2554_s15  ;;  %s124_s19 = sadd.s32 20, %s2561_s17 }
  0x4c   :  { %vm97_vm12 = vmor %vm95_vm9, %vm96_vm3  ;;  %v116_v32 = vstv %s113_s2  ;;  %v125_v33 = vstv %s2554_s15  ;;  %v134_v35 = vstv %s2561_s17  ;;  %v127_v37 = vstv %s124_s19  ;;  %s2400_s22 = smov 64   ;;  %s2408_s2 = smov [#allocation10]  }
  0x4d   :  { %2152 = vmatpush3.bf16.msk.msra.mxu0 %vm2576_vm5, %v2150_v20  ;;  %2048 = vmatmul.mubr.msk.f32.vlgmr.msra.gmra.mrb[0].mxu1 %vm3153_vm6, %v270_v26  ;;  %v1924_v34 = vsel %vm97_vm12, 1.0, %v2397_v18  ;;  %vm107_vm15 = vmor %vm2583_vm8, %vm106_vm13  ;;  %vm117_vm2 = vcmp.eq.s32.totalorder %v2535_v13, %v116_v32  ;;  %vm3152_vm5 = vcmask 1041408   ;;  %vm2624_vm7 = vcmp.eq.s32.totalorder %v2535_v13, %v125_v33 }
  0x4e   :  { %2161 = vmatpush3.bf16.msra.mxu1 %v2530_v9  ;;  %2058 = vmatprep.mubr.msk.f32.mxu1 %vm3154_vm1, %v2397_v18  ;;  %vm108_vm4 = vmor %vm107_vm15, %vm96_vm3  ;;  %v136_v38 = vstv %s133_s16  ;;  %vm128_vm12 = vcmp.eq.s32.totalorder %v2535_v13, %v127_v37  ;;  %v143_v41 = vstv %s2545_s29  ;;  %v145_v42 = vstv %s142_s14  ;;  %s1912_s16 = sshll.u32 %s2408_s2, 4  ;;  %s1913_s16 = int_to_ptr.vmem [resolvable:$true] %s1912_s16 }
  0x4f   :  { %vm2633_vm8 = vmor %vm2593_vm10, %vm164_vm11  ;;  %2162 = vmatprep.subr.bf16.mxu1 %v2395_v4  ;;  %2165 = vmatprep.subr.bf16.mxu0 %v2395_v4  ;;  %v1927_v40 = vsel %vm108_vm4, 1.0, %v2397_v18  ;;  %vm135_vm11 = vcmp.eq.s32.totalorder %v2535_v13, %v134_v35  ;;  %vm137_vm13 = vcmp.eq.s32.totalorder %v2535_v13, %v136_v38  ;;  %v152_v45 = vstv %s2537_s27  ;;  %s2359_s14 = scalar_lea.vmem %s1913_s16, 16  ;;  %s2363_s19 = scalar_lea.vmem %s1913_s16, 32 }
  0x50   :  { %vm118_vm9 = vmor %vm2602_vm14, %vm117_vm2  ;;  %v170_v43 = vsel %vm3151_vm0, %v1924_v34, %v1927_v40  ;;  %v154_v46 = vstv %s151_s20  ;;  %vm173_vm14 = vcmask 1042432   ;;  %vm144_vm4 = vcmp.eq.s32.totalorder %v2535_v13, %v143_v41  ;;  %p2360_p13 = scmp.ne.s32.totalorder %s1913_s16, %s2359_s14  ;;  %p2364_p0 = scmp.lt.s32.totalorder %s1913_s16, %s1913_s16 }
  0x51   :  { %vm119_vm10 = vmor %vm118_vm9, %vm96_vm3  ;;  %vm146_vm9 = vcmp.eq.s32.totalorder %v2535_v13, %v145_v42  ;;  %vm153_vm0 = vcmp.eq.s32.totalorder %v2535_v13, %v152_v45  ;;  %vm177_vm6 = vcmask 1044480   ;;  %p2365_p1 = scmp.lt.s32.totalorder %s2363_s19, %s2359_s14 }
  0x52   :  { %v1930_v44 = vsel %vm119_vm10, 1.0, %v2397_v18  ;;  %vm129_vm15 = vmor %vm2624_vm7, %vm128_vm12  ;;  %2164 = vmatpush3.bf16.msra.mxu1 %v2543_v14  ;;  %vm175_vm7 = vcmask 1043456  }
  0x53   :  { %v172_v47 = vsel %vm3152_vm5, %v170_v43, %v1930_v44  ;;  %vm130_vm2 = vmor %vm129_vm15, %vm96_vm3  ;;  %2171 = vmatprep.subr.bf16.mxu1 %v2395_v4  ;;  %vm155_vm5 = vcmp.eq.s32.totalorder %v2535_v13, %v154_v46  ;;  %p2366_p2 = por %p2365_p1, %p2364_p0 }
  0x54   :  { %v1933_v48 = vsel %vm130_vm2, 1.0, %v2397_v18  ;;  %vm138_vm10 = vmor %vm135_vm11, %vm137_vm13  ;;  %vm179_vm13 = vcmask 1045504  }
  0x55   :  { %vm139_vm12 = vmor %vm138_vm10, %vm96_vm3  ;;  %v174_v49 = vsel %vm173_vm14, %v172_v47, %v1933_v48  ;;  %vm181_vm10 = vcmask 1046528   ;;  %p2367_p3 = pnand %p2366_p2, %p2360_p13 }
  0x56   :  { %v1934_v50 = vsel %vm139_vm12, 1.0, %v2397_v18  ;;  %vm147_vm15 = vmor %vm144_vm4, %vm146_vm9  ;;  %vm189_vm9 = vcmask 334848  }
  0x57   :  { %vm148_vm1 = vmor %vm147_vm15, %vm96_vm3  ;;  %v176_v51 = vsel %vm175_vm7, %v174_v49, %v1934_v50 }
  0x58   :  { %v1935_v52 = vsel %vm148_vm1, 1.0, %v2397_v18  ;;  %vm156_vm11 = vmor %vm153_vm0, %vm155_vm5  ;;  %vm3170_vm0 = vmmov 0   ;;  %vm3171_vm1 = vcmask 261120   ;;  %vm3173_vm5 = vcmask 1040384  }
  0x59   :  { %vm157_vm2 = vmor %vm156_vm11, %vm96_vm3  ;;  %v178_v53 = vsel %vm177_vm6, %v176_v51, %v1935_v52 }
  0x5a   :  { %v1936_v54 = vsel %vm157_vm2, 1.0, %v2397_v18  ;;  %vm166_vm4 = vmor %vm2633_vm8, %vm96_vm3  ;;  %vm3174_vm8 = vcmask 1041408  }
  0x5b   :  { %v1937_v55 = vsel %vm166_vm4, 1.0, %v2397_v18  ;;  %v180_v56 = vsel %vm179_vm13, %v178_v53, %v1936_v54  ;;  %vm3172_vm3 = vmmov %vm3171_vm1 }
  0x5c   :  { %v182_v57 = vsel %vm181_vm10, %v180_v56, %v1937_v55  ;;  %vm3175_vm12 = vmmov %vm3171_vm1 }
  0x5d   :  { %2037 = vmatmul.mubr.msk.f32.vlgmr.msra.gmra.mrb[0].mxu0 %vm189_vm9, %v182_v57  ;;  %vm3176_vm15 = vmmov %vm3171_vm1 }
  0x5e   :  { %2167 = vmatpush3.bf16.msra.mxu0 %v2530_v9  ;;  %2069 = vmatprep.mubr.msk.f32.mxu0 %vm3170_vm0, %v2397_v18  ;;  %vm3177_vm11 = vmmov %vm3171_vm1 }
  0x5f   :  { %2168 = vmatprep.subr.bf16.mxu0 %v2395_v4  ;;  %vm3178_vm2 = vmmov %vm3171_vm1 }
  0x60   :  { %vm3179_vm4 = vmmov %vm3171_vm1 }
  0x61   :  { %vm3180_vm9 = vmmov %vm3171_vm1 }
  0x62   :  { %2170 = vmatpush3.bf16.msra.mxu0 %v2543_v14 }
  0x63   :  { %2177 = vmatprep.subr.bf16.mxu0 %v2395_v4 }
 0x120   :  { %v342_v58 = vpop.f32.mrb[0].mxu1 }
 0x121   :  { %v2049_v59 = vpop.f32.mrb[1].mxu1 }
 0x130   :  { %v2690_v60 = vpop.f32.mrb[0].mxu0 }
 0x131   :  { %v346_v61 = vadd.f32 %v342_v58, %v2690_v60  ;;  %v2038_v62 = vpop.f32.mrb[1].mxu0 }
 0x133   :  { %v1941_v63 = vmul.f32 -1.442695, %v346_v61 }
 0x135   :  { %2235 = vpow2.f32 %v1941_v63 }
 0x13f   :  { %v2236_v0 = vpop.eup %2235 }
 0x140   :  { %v350_v1 = vadd.f32 1.0, %v2236_v0 }
 0x142   :  { %2237 = vrcp.f32 %v350_v1 }
 0x14c   :  { %v2238_v2 = vpop.eup %2237 }
 0x14d   :  { %v353_v5 = vmul.f32 2.0, %v2238_v2 }
 0x14f   :  { %v1942_v6 = vadd.f32 -1.0, %v353_v5 }
 0x151   :  { %361 = vrot.lane.b32.xlu0 %v1942_v6, %s2399_s21 }
 0x155   :  { %356 = vrot.lane.b32.xlu0 %v271_v7, %s2399_s21 }
 0x1c3   :  { %v362_v8 = vpop.permute.xlu0 %361 }
 0x1c4   :  { %v364_v10 = vmul.f32 %v2238_v2, %v362_v8 }
 0x1c6   :  { %366 = vrot.lane.b32.xlu1 %v364_v10, %s2399_s21 }
 0x1c7   :  { %v357_v11 = vpop.permute.xlu0 %356 }
 0x1c8   :  { %v359_v12 = vmul.f32 %v2238_v2, %v357_v11 }
 0x238   :  { %v367_v15 = vpop.permute.xlu1 %366 }
 0x239   :  { %v369_v16 = vadd.f32 %v367_v15, %v359_v12 }
 0x23b   :  { %2239 = vtanh.f32 %v369_v16  ;;  %v464_v34 = vrot.slane %v369_v16, 7 }
 0x245   :  { %v2240_v17 = vpop.eup %2239 }
 0x246   :  { %372 = vrot.lane.b32.xlu1 %v2240_v17, %s2399_s21 }
 0x2b8   :  { %v373_v19 = vpop.permute.xlu1 %372 }
 0x2b9   :  { %v2697_v20 = vmul.f32 %v2238_v2, %v373_v19 }
 0x2bb   :  { %377 = vrot.lane.b32.xlu0 %v2697_v20, %s2400_s22 }
 0x32d   :  { %v378_v21 = vpop.permute.xlu0 %377 }
 0x32e   :  { %2059 = vmatmul.mubr.msk.f32.vlgmr.msra.gmra.mrb[2].mxu1 %vm3171_vm1, %v378_v21  ;;  %vm3182_vm1 = vmmov %vm3174_vm8 }
 0x32f   :  { %2173 = vmatpush3.bf16.msra.mxu1 %v2530_v9  ;;  %2080 = vmatprep.mubr.msk.f32.mxu1 %vm3170_vm0, %v2397_v18 }
 0x330   :  { %2174 = vmatprep.subr.bf16.mxu1 %v2395_v4 }
 0x333   :  { %2176 = vmatpush3.bf16.msra.mxu1 %v2543_v14 }
 0x334   :  { %2183 = vmatprep.subr.bf16.mxu1 %v2395_v4 }
 0x401   :  { %v447_v22 = vpop.f32.mrb[2].mxu1 }
 0x402   :  { %v452_v23 = vrot.slane %v447_v22, 7  ;;  %v2060_v24 = vpop.f32.mrb[3].mxu1 }
 0x404   :  { %v454_v25 = vadd.f32 %v452_v23, %v2690_v60 }
 0x406   :  { %v1944_v26 = vmul.f32 -1.442695, %v454_v25 }
 0x408   :  { %2241 = vpow2.f32 %v1944_v26 }
 0x412   :  { %v2242_v27 = vpop.eup %2241 }
 0x413   :  { %v458_v28 = vadd.f32 1.0, %v2242_v27 }
 0x415   :  { %2243 = vrcp.f32 %v458_v28 }
 0x41f   :  { %v2244_v29 = vpop.eup %2243 }
 0x420   :  { %v461_v30 = vmul.f32 2.0, %v2244_v29  ;;  %v466_v35 = vmul.f32 %v2244_v29, %v464_v34 }
 0x422   :  { %v1945_v31 = vadd.f32 -1.0, %v461_v30 }
 0x424   :  { %468 = vrot.lane.b32.xlu1 %v1945_v31, %s2399_s21 }
 0x496   :  { %v469_v32 = vpop.permute.xlu1 %468 }
 0x497   :  { %v471_v33 = vmul.f32 %v2244_v29, %v469_v32 }
 0x499   :  { %473 = vrot.lane.b32.xlu0 %v471_v33, %s2399_s21 }
 0x50b   :  { %v474_v36 = vpop.permute.xlu0 %473 }
 0x50c   :  { %v476_v37 = vadd.f32 %v474_v36, %v466_v35 }
 0x50e   :  { %2245 = vtanh.f32 %v476_v37  ;;  %v572_v55 = vrot.slane %v476_v37, 7 }
 0x518   :  { %v2246_v38 = vpop.eup %2245 }
 0x519   :  { %479 = vrot.lane.b32.xlu1 %v2246_v38, %s2399_s21 }
 0x58b   :  { %v480_v39 = vpop.permute.xlu1 %479 }
 0x58c   :  { %v2712_v40 = vmul.f32 %v2244_v29, %v480_v39 }
 0x58e   :  { %v484_v41 = vrot.slane %v2712_v40, 1  ;;  %v1131_v63 = vsel %vm3173_vm5, %v2697_v20, %v2712_v40 }
 0x590   :  { %485 = vrot.lane.b32.xlu0 %v484_v41, %s2400_s22 }
 0x602   :  { %v486_v42 = vpop.permute.xlu0 %485 }
 0x603   :  { %2070 = vmatmul.mubr.msk.f32.vlgmr.msra.gmra.mrb[2].mxu0 %vm3172_vm3, %v486_v42  ;;  %vm1170_vm3 = vcmask 130048  }
 0x604   :  { %2179 = vmatpush3.bf16.msra.mxu0 %v2530_v9  ;;  %2091 = vmatprep.mubr.msk.f32.mxu0 %vm3170_vm0, %v2397_v18 }
 0x605   :  { %2180 = vmatprep.subr.bf16.mxu0 %v2395_v4 }
 0x608   :  { %2182 = vmatpush3.bf16.msra.mxu0 %v2543_v14 }
 0x609   :  { %2189 = vmatprep.subr.bf16.mxu0 %v2395_v4 }
 0x6d6   :  { %v555_v43 = vpop.f32.mrb[2].mxu0 }
 0x6d7   :  { %v560_v44 = vrot.slane %v555_v43, 6  ;;  %v2071_v45 = vpop.f32.mrb[3].mxu0 }
 0x6d9   :  { %v562_v46 = vadd.f32 %v560_v44, %v2690_v60 }
 0x6db   :  { %v1947_v47 = vmul.f32 -1.442695, %v562_v46 }
 0x6dd   :  { %2247 = vpow2.f32 %v1947_v47 }
 0x6e7   :  { %v2248_v48 = vpop.eup %2247 }
 0x6e8   :  { %v566_v49 = vadd.f32 1.0, %v2248_v48 }
 0x6ea   :  { %2249 = vrcp.f32 %v566_v49 }
 0x6f4   :  { %v2250_v50 = vpop.eup %2249 }
 0x6f5   :  { %v569_v51 = vmul.f32 2.0, %v2250_v50  ;;  %v574_v56 = vmul.f32 %v2250_v50, %v572_v55 }
 0x6f7   :  { %v1948_v52 = vadd.f32 -1.0, %v569_v51 }
 0x6f9   :  { %576 = vrot.lane.b32.xlu1 %v1948_v52, %s2399_s21 }
 0x76b   :  { %v577_v53 = vpop.permute.xlu1 %576 }
 0x76c   :  { %v579_v54 = vmul.f32 %v2250_v50, %v577_v53 }
 0x76e   :  { %581 = vrot.lane.b32.xlu0 %v579_v54, %s2399_s21 }
 0x7e0   :  { %v582_v57 = vpop.permute.xlu0 %581 }
 0x7e1   :  { %v584_v58 = vadd.f32 %v582_v57, %v574_v56 }
 0x7e3   :  { %2251 = vtanh.f32 %v584_v58  ;;  %v680_v22 = vrot.slane %v584_v58, 7 }
 0x7ed   :  { %v2252_v59 = vpop.eup %2251 }
 0x7ee   :  { %587 = vrot.lane.b32.xlu1 %v2252_v59, %s2399_s21 }
 0x860   :  { %v588_v61 = vpop.permute.xlu1 %587 }
 0x861   :  { %v2727_v62 = vmul.f32 %v2250_v50, %v588_v61 }
 0x863   :  { %v1132_v0 = vsel %vm3174_vm8, %v1131_v63, %v2727_v62  ;;  %v592_v1 = vrot.slane %v2727_v62, 2  ;;  %vm3184_vm8 = vmmov %vm3178_vm2 }
 0x865   :  { %593 = vrot.lane.b32.xlu0 %v592_v1, %s2400_s22 }
 0x8d7   :  { %v594_v2 = vpop.permute.xlu0 %593 }
 0x8d8   :  { %2081 = vmatmul.mubr.msk.f32.vlgmr.msra.gmra.mrb[4].mxu1 %vm3175_vm12, %v594_v2  ;;  %vm3185_vm12 = vmmov %vm3178_vm2 }
 0x8d9   :  { %2185 = vmatpush3.bf16.msra.mxu1 %v2530_v9  ;;  %2102 = vmatprep.mubr.msk.f32.mxu1 %vm3170_vm0, %v2397_v18 }
 0x8da   :  { %2186 = vmatprep.subr.bf16.mxu1 %v2395_v4 }
 0x8dd   :  { %2188 = vmatpush3.bf16.msra.mxu1 %v2543_v14 }
 0x8de   :  { %2195 = vmatprep.subr.bf16.mxu1 %v2395_v4 }
 0x9ab   :  { %v663_v5 = vpop.f32.mrb[4].mxu1 }
 0x9ac   :  { %v668_v6 = vrot.slane %v663_v5, 5  ;;  %v2082_v7 = vpop.f32.mrb[5].mxu1 }
 0x9ae   :  { %v670_v8 = vadd.f32 %v668_v6, %v2690_v60 }
 0x9b0   :  { %v1950_v10 = vmul.f32 -1.442695, %v670_v8 }
 0x9b2   :  { %2253 = vpow2.f32 %v1950_v10 }
 0x9bc   :  { %v2254_v11 = vpop.eup %2253 }
 0x9bd   :  { %v674_v12 = vadd.f32 1.0, %v2254_v11 }
 0x9bf   :  { %2255 = vrcp.f32 %v674_v12 }
 0x9c9   :  { %v2256_v15 = vpop.eup %2255 }
 0x9ca   :  { %v677_v16 = vmul.f32 2.0, %v2256_v15  ;;  %v682_v23 = vmul.f32 %v2256_v15, %v680_v22 }
 0x9cc   :  { %v1951_v17 = vadd.f32 -1.0, %v677_v16 }
 0x9ce   :  { %684 = vrot.lane.b32.xlu1 %v1951_v17, %s2399_s21 }
 0xa40   :  { %v685_v19 = vpop.permute.xlu1 %684 }
 0xa41   :  { %v687_v21 = vmul.f32 %v2256_v15, %v685_v19 }
 0xa43   :  { %689 = vrot.lane.b32.xlu0 %v687_v21, %s2399_s21 }
 0xab5   :  { %v690_v24 = vpop.permute.xlu0 %689 }
 0xab6   :  { %v692_v25 = vadd.f32 %v690_v24, %v682_v23 }
 0xab8   :  { %2257 = vtanh.f32 %v692_v25  ;;  %v788_v45 = vrot.slane %v692_v25, 7 }
 0xac2   :  { %v2258_v26 = vpop.eup %2257 }
 0xac3   :  { %695 = vrot.lane.b32.xlu1 %v2258_v26, %s2399_s21 }
 0xb35   :  { %v696_v27 = vpop.permute.xlu1 %695 }
 0xb36   :  { %v2747_v28 = vmul.f32 %v2256_v15, %v696_v27 }
 0xb38   :  { %v1133_v29 = vsel %vm173_vm14, %v1132_v0, %v2747_v28  ;;  %v700_v30 = vrot.slane %v2747_v28, 3 }
 0xb3a   :  { %701 = vrot.lane.b32.xlu0 %v700_v30, %s2400_s22 }
 0xbac   :  { %v702_v31 = vpop.permute.xlu0 %701 }
 0xbad   :  { %2092 = vmatmul.mubr.msk.f32.vlgmr.msra.gmra.mrb[4].mxu0 %vm3176_vm15, %v702_v31 }
 0xbae   :  { %2191 = vmatpush3.bf16.msra.mxu0 %v2530_v9  ;;  %2113 = vmatprep.mubr.msk.f32.mxu0 %vm3170_vm0, %v2397_v18 }
 0xbaf   :  { %2192 = vmatprep.subr.bf16.mxu0 %v2395_v4 }
 0xbb2   :  { %2194 = vmatpush3.bf16.msra.mxu0 %v2543_v14 }
 0xbb3   :  { %2201 = vmatprep.subr.bf16.mxu0 %v2395_v4 }
 0xc80   :  { %v771_v32 = vpop.f32.mrb[4].mxu0 }
 0xc81   :  { %v776_v33 = vrot.slane %v771_v32, 4  ;;  %v2093_v34 = vpop.f32.mrb[5].mxu0 }
 0xc83   :  { %v778_v35 = vadd.f32 %v776_v33, %v2690_v60 }
 0xc85   :  { %v1953_v36 = vmul.f32 -1.442695, %v778_v35 }
 0xc87   :  { %2259 = vpow2.f32 %v1953_v36 }
 0xc91   :  { %v2260_v37 = vpop.eup %2259 }
 0xc92   :  { %v782_v38 = vadd.f32 1.0, %v2260_v37 }
 0xc94   :  { %2261 = vrcp.f32 %v782_v38 }
 0xc9e   :  { %v2262_v39 = vpop.eup %2261 }
 0xc9f   :  { %v785_v41 = vmul.f32 2.0, %v2262_v39  ;;  %v790_v46 = vmul.f32 %v2262_v39, %v788_v45 }
 0xca1   :  { %v1954_v42 = vadd.f32 -1.0, %v785_v41 }
 0xca3   :  { %792 = vrot.lane.b32.xlu1 %v1954_v42, %s2399_s21 }
 0xd15   :  { %v793_v43 = vpop.permute.xlu1 %792 }
 0xd16   :  { %v795_v44 = vmul.f32 %v2262_v39, %v793_v43 }
 0xd18   :  { %797 = vrot.lane.b32.xlu0 %v795_v44, %s2399_s21 }
 0xd8a   :  { %v798_v47 = vpop.permute.xlu0 %797 }
 0xd8b   :  { %v800_v48 = vadd.f32 %v798_v47, %v790_v46 }
 0xd8d   :  { %2263 = vtanh.f32 %v800_v48 }
 0xd97   :  { %v2264_v49 = vpop.eup %2263 }
 0xd98   :  { %803 = vrot.lane.b32.xlu1 %v2264_v49, %s2399_s21 }
 0xe0a   :  { %v804_v50 = vpop.permute.xlu1 %803 }
 0xe0b   :  { %v2764_v51 = vmul.f32 %v2262_v39, %v804_v50 }
 0xe0d   :  { %v1134_v52 = vsel %vm175_vm7, %v1133_v29, %v2764_v51  ;;  %v808_v53 = vrot.slane %v2764_v51, 4 }
 0xe0f   :  { %809 = vrot.lane.b32.xlu0 %v808_v53, %s2400_s22 }
 0xe81   :  { %v810_v54 = vpop.permute.xlu0 %809 }
 0xe82   :  { %2103 = vmatmul.mubr.msk.f32.vlgmr.msra.gmra.mrb[6].mxu1 %vm3177_vm11, %v810_v54 }
 0xe83   :  { %2197 = vmatpush3.bf16.msra.mxu1 %v2530_v9  ;;  %2124 = vmatprep.mubr.msk.f32.mxu1 %vm3170_vm0, %v2397_v18 }
 0xe84   :  { %2198 = vmatprep.subr.bf16.mxu1 %v2395_v4 }
 0xe87   :  { %2200 = vmatpush3.bf16.msra.mxu1 %v2543_v14  ;;  %v896_v14 = vrot.slane %v800_v48, 7 }
 0xf55   :  { %v879_v55 = vpop.f32.mrb[6].mxu1 }
 0xf56   :  { %v884_v56 = vrot.slane %v879_v55, 3  ;;  %v2104_v57 = vpop.f32.mrb[7].mxu1 }
 0xf58   :  { %v886_v58 = vadd.f32 %v884_v56, %v2690_v60 }
 0xf5a   :  { %v1956_v59 = vmul.f32 -1.442695, %v886_v58 }
 0xf5c   :  { %2265 = vpow2.f32 %v1956_v59 }
 0xf66   :  { %v2266_v61 = vpop.eup %2265 }
 0xf67   :  { %v890_v63 = vadd.f32 1.0, %v2266_v61  ;;  %v1172_v61 = vld [vmem:[%s3144_s4] sm:$0xff] }
 0xf69   :  { %2267 = vrcp.f32 %v890_v63  ;;  %v1173_v63 = vld [vmem:[%s3144_s4 + $0x8] sm:$0xff] }
 0xf73   :  { %v2268_v0 = vpop.eup %2267 }
 0xf74   :  { %v893_v1 = vmul.f32 2.0, %v2268_v0  ;;  %v898_v6 = vmul.f32 %v2268_v0, %v896_v14 }
 0xf76   :  { %v1957_v9 = vadd.f32 -1.0, %v893_v1  ;;  %v2202_v1 = vpack.c.bf16 %v1173_v63, %v1172_v61  ;;  %v1258_v61 = vld [vmem:[%s3147_s7] sm:$0xff]  ;;  %v2403_v63 = vmov 1  }
 0xf78   :  { %900 = vrot.lane.b32.xlu1 %v1957_v9, %s2399_s21  ;;  %v1175_v9 = vld [vmem:[%s3144_s4 + $0x18] sm:$0xff] }
 0xfea   :  { %v901_v2 = vpop.permute.xlu1 %900 }
 0xfeb   :  { %v903_v5 = vmul.f32 %v2268_v0, %v901_v2 }
 0xfed   :  { %905 = vrot.lane.b32.xlu0 %v903_v5, %s2399_s21 }
0x105f   :  { %v906_v7 = vpop.permute.xlu0 %905 }
0x1060   :  { %v908_v8 = vadd.f32 %v906_v7, %v898_v6  ;;  %v1256_v6 = vld [vmem:[%s3145_s5] sm:$0xff] }
0x1062   :  { %2269 = vtanh.f32 %v908_v8 }
0x106c   :  { %v2270_v10 = vpop.eup %2269 }
0x106d   :  { %911 = vrot.lane.b32.xlu1 %v2270_v10, %s2399_s21 }
0x10df   :  { %v912_v11 = vpop.permute.xlu1 %911 }
0x10e0   :  { %v2780_v12 = vmul.f32 %v2268_v0, %v912_v11  ;;  %v1174_v0 = vld [vmem:[%s3144_s4 + $0x10] sm:$0xff] }
0x10e1   :  { %v2205_v2 = vpack.c.bf16 %v1175_v9, %v1174_v0 }
0x10e2   :  { %v1135_v15 = vsel %vm177_vm6, %v1134_v52, %v2780_v12  ;;  %v916_v16 = vrot.slane %v2780_v12, 5  ;;  %v1143_v11 = vrot.slane %v2780_v12, 3  ;;  %v1153_v12 = vrot.slane %v2697_v20, 1  ;;  %v1257_v20 = vld [vmem:[%s3145_s5 + $0x8] sm:$0x7] }
0x10e4   :  { %917 = vrot.lane.b32.xlu0 %v916_v16, %s2400_s22  ;;  %v1147_v16 = vrot.slane %v2747_v28, 7 }
0x1156   :  { %v918_v17 = vpop.permute.xlu0 %917 }
0x1157   :  { %2114 = vmatmul.mubr.msk.f32.vlgmr.msra.gmra.mrb[6].mxu0 %vm3178_vm2, %v918_v17 }
0x1158   :  { %2135 = vmatprep.mubr.msk.f32.mxu0 %vm3170_vm0, %v2397_v18  ;;  %v1004_v18 = vrot.slane %v908_v8, 7  ;;  %2203 = vmatpush3.bf16.msra.mxu0 %v2202_v1  ;;  %vm3181_vm0 = vmmov %vm3173_vm5 }
0x1159   :  { %2204 = vmatprep.subr.bf16.mxu0 %v2395_v4  ;;  %vm3183_vm5 = vmmov %vm3178_vm2 }
0x115c   :  { %2206 = vmatpush3.bf16.msra.mxu0 %v2205_v2 }
0x122a   :  { %v987_v19 = vpop.f32.mrb[6].mxu0 }
0x122b   :  { %v992_v21 = vrot.slane %v987_v19, 2  ;;  %v2115_v22 = vpop.f32.mrb[7].mxu0  ;;  %v1149_v19 = vrot.slane %v2727_v62, 5 }
0x122c   :  { %v1151_v22 = vrot.slane %v2712_v40, 3  ;;  %v2401_v40 = vmov 0  }
0x122d   :  { %v994_v23 = vadd.f32 %v992_v21, %v2690_v60  ;;  %2228 = vset.pattern.permute.xlu1 %v2401_v40  ;;  %2227 = vset.pattern.permute.xlu0 %v2401_v40 }
0x122f   :  { %v1959_v24 = vmul.f32 -1.442695, %v994_v23 }
0x1231   :  { %2271 = vpow2.f32 %v1959_v24 }
0x123b   :  { %v2272_v25 = vpop.eup %2271 }
0x123c   :  { %v998_v26 = vadd.f32 1.0, %v2272_v25 }
0x123e   :  { %2273 = vrcp.f32 %v998_v26 }
0x1248   :  { %v2274_v27 = vpop.eup %2273 }
0x1249   :  { %v1001_v29 = vmul.f32 2.0, %v2274_v27  ;;  %v1006_v33 = vmul.f32 %v2274_v27, %v1004_v18 }
0x124b   :  { %v1960_v30 = vadd.f32 -1.0, %v1001_v29 }
0x124d   :  { %1008 = vrot.lane.b32.xlu1 %v1960_v30, %s2399_s21  ;;  %v2847_v30 = vld [vmem:[#allocation9] sm:$0xff] }
0x12bf   :  { %v1009_v31 = vpop.permute.xlu1 %1008 }
0x12c0   :  { %v1011_v32 = vmul.f32 %v2274_v27, %v1009_v31  ;;  %v2849_v31 = vld [vmem:[#allocation9 + $0x8] sm:$0x7] }
0x12c2   :  { %1013 = vrot.lane.b32.xlu0 %v1011_v32, %s2399_s21  ;;  %v2402_v32 = vmov -10000.0  }
0x1334   :  { %v1014_v34 = vpop.permute.xlu0 %1013 }
0x1335   :  { %v1016_v35 = vadd.f32 %v1014_v34, %v1006_v33  ;;  %v2852_v33 = vadd.f32 -10000.0, %v2847_v30 }
0x1337   :  { %2275 = vtanh.f32 %v1016_v35  ;;  %v1112_v56 = vrot.slane %v1016_v35, 7 }
0x1341   :  { %v2276_v36 = vpop.eup %2275 }
0x1342   :  { %1019 = vrot.lane.b32.xlu1 %v2276_v36, %s2399_s21 }
0x13b4   :  { %v1020_v37 = vpop.permute.xlu1 %1019 }
0x13b5   :  { %v1022_v38 = vmul.f32 %v2274_v27, %v1020_v37  ;;  %v2841_v27 = vshrl.u32 %v86_v3, 7 }
0x13b7   :  { %v1024_v39 = vrot.slane %v1022_v38, 6  ;;  %v1136_v41 = vsel %vm179_vm13, %v1135_v15, %v1022_v38  ;;  %v1141_v7 = vrot.slane %v1022_v38, 5  ;;  %v1145_v15 = vrot.slane %v2764_v51, 1 }
0x13b8   :  { %v2844_v29 = vadd.s32 8, %v2841_v27 }
0x13b9   :  { %1025 = vrot.lane.b32.xlu0 %v1024_v39, %s2400_s22 }
0x142b   :  { %v1026_v42 = vpop.permute.xlu0 %1025 }
0x142c   :  { %2125 = vmatmul.mubr.msk.f32.vlgmr.msra.gmra.mrb[8].mxu1 %vm3179_vm4, %v1026_v42 }
0x142d   :  { %2140 = vmatprep.mubr.msk.f32.mxu1 %vm3180_vm9, %v1256_v6 }
0x14ff   :  { %v1095_v43 = vpop.f32.mrb[8].mxu1 }
0x1500   :  { %v1100_v44 = vrot.slane %v1095_v43, 1  ;;  %v2126_v45 = vpop.f32.mrb[9].mxu1  ;;  %v1964_v43 = vld [vmem:[%s3146_s6] ss:$0 sm:$0xff] }
0x1502   :  { %v1102_v46 = vadd.f32 %v1100_v44, %v2690_v60 }
0x1504   :  { %v1962_v47 = vmul.f32 -1.442695, %v1102_v46 }
0x1506   :  { %2277 = vpow2.f32 %v1962_v47 }
0x1510   :  { %v2278_v48 = vpop.eup %2277 }
0x1511   :  { %v1106_v49 = vadd.f32 1.0, %v2278_v48  ;;  %v1395_v48 = vsub.s32 0, %v2841_v27 }
0x1513   :  { %2279 = vrcp.f32 %v1106_v49 }
0x151d   :  { %v2280_v50 = vpop.eup %2279 }
0x151e   :  { %v1109_v52 = vmul.f32 2.0, %v2280_v50  ;;  %v1114_v57 = vmul.f32 %v2280_v50, %v1112_v56 }
0x1520   :  { %v1963_v53 = vadd.f32 -1.0, %v1109_v52  ;;  %v2879_v52 = vld [vmem:[%s3149_s9] sm:$0xff] }
0x1522   :  { %1116 = vrot.lane.b32.xlu1 %v1963_v53, %s2399_s21 }
0x1594   :  { %v1117_v54 = vpop.permute.xlu1 %1116 }
0x1595   :  { %v1119_v55 = vmul.f32 %v2280_v50, %v1117_v54 }
0x1597   :  { %1121 = vrot.lane.b32.xlu0 %v1119_v55, %s2399_s21 }
0x1609   :  { %v1122_v58 = vpop.permute.xlu0 %1121 }
0x160a   :  { %v1124_v59 = vadd.f32 %v1122_v58, %v1114_v57  ;;  %v1259_v58 = vld [vmem:[%s3147_s7 + $0x8] sm:$0x7]  ;;  %s2406_s7 = smov 125  }
0x160c   :  { %2281 = vtanh.f32 %v1124_v59 }
0x1616   :  { %v2282_v60 = vpop.eup %2281 }
0x1617   :  { %1127 = vrot.lane.b32.xlu1 %v2282_v60, %s2399_s21 }
0x1689   :  { %v1128_v5 = vpop.permute.xlu1 %1127 }
0x168a   :  { %v1130_v14 = vmul.f32 %v2280_v50, %v1128_v5  ;;  %v2874_v50 = vld [vmem:[%s3149_s9 + $0x8] sm:$0x7] }
0x168c   :  { %v1139_v8 = vrot.slane %v1130_v14, 7  ;;  %v1137_v10 = vsel %vm181_vm10, %v1136_v41, %v1130_v14 }
0x168d   :  { %1163 = vrot.lane.b32.xlu0 %v1137_v10, %s2400_s22 }
0x168e   :  { %v1155_v4 = vsel %vm3181_vm0, %v1139_v8, %v1141_v7 }
0x168f   :  { %v1156_v17 = vsel %vm3182_vm1, %v1155_v4, %v1143_v11 }
0x1690   :  { %v1157_v21 = vsel %vm173_vm14, %v1156_v17, %v1145_v15 }
0x1691   :  { %v1158_v23 = vsel %vm175_vm7, %v1157_v21, %v1147_v16  ;;  %vm1359_vm7 = vcmp.eq.s32.totalorder %v2844_v29, 9 }
0x1692   :  { %v1159_v24 = vsel %vm177_vm6, %v1158_v23, %v1149_v19  ;;  %vm3186_vm6 = vmmov %vm3178_vm2  ;;  %v1361_v18 = vsel %vm1359_vm7, 0.0, %v2402_v32 }
0x1693   :  { %v1160_v51 = vsel %vm179_vm13, %v1159_v24, %v1151_v22  ;;  %v2855_v34 = vadd.f32 %v1361_v18, %v2849_v31  ;;  %vm1364_vm13 = vcmask 89088  }
0x1694   :  { %v1161_v25 = vsel %vm181_vm10, %v1160_v51, %v1153_v12  ;;  %vm1366_vm10 = vcmask 83968   ;;  %v1365_v3 = vsel %vm1364_vm13, %v2852_v33, -inf  ;;  %v1482_v51 = vsub.s32 2, %v2841_v27 }
0x1695   :  { %1167 = vrot.lane.b32.xlu1 %v1161_v25, %s2400_s22  ;;  %v1367_v35 = vsel %vm1366_vm10, %v2855_v34, -inf }
0x1696   :  { %v1368_v36 = vmax.f32 %v1365_v3, %v1367_v35 }
0x1698   :  { %v1369_v37 = vrot.slane %v1368_v36, 4 }
0x169a   :  { %v1370_v38 = vmax.f32 %v1368_v36, %v1369_v37  ;;  %v2404_v37 = vmov 3  }
0x169c   :  { %v1371_v39 = vrot.slane %v1370_v38, 2 }
0x169e   :  { %v1372_v41 = vmax.f32 %v1370_v38, %v1371_v39 }
0x16a0   :  { %v1373_v42 = vrot.slane %v1372_v41, 1 }
0x16a2   :  { %v2864_v44 = vmax.f32 %v1372_v41, %v1373_v42 }
0x16ff   :  { %v1164_v28 = vpop.permute.xlu0 %1163 }
0x1707   :  { %v1168_v26 = vpop.permute.xlu1 %1167 }
0x1708   :  { %v1171_v62 = vsel %vm1170_vm3, %v1164_v28, %v1168_v26 }
0x1709   :  { %2136 = vmatmul.mubr.msk.f32.vlgmr.msra.gmra.mrb[8].mxu0 %vm3183_vm5, %v1171_v62  ;;  %2138 = vmatprep.subr.msk.mxu1 %vm3184_vm8, %v1171_v62 }
0x170a   :  { %2139 = vmatpush3.xpose.msk.msra.mxu1 %vm3185_vm12, %v1171_v62 }
0x170d   :  { %2141 = vmatmul.mubr.msk.f32.vlgmr.msra.gmra.mrb[10].mxu1 %vm3186_vm6, %v1257_v20 }
0x17dc   :  { %v1252_v45 = vpop.f32.mrb[8].mxu0 }
0x17dd   :  { %v2866_v46 = vadd.f32 %v1964_v43, %v1252_v45  ;;  %v2137_v47 = vpop.f32.mrb[9].mxu0 }
0x17df   :  { %v1392_v49 = vadd.f32 %v2864_v44, %v2866_v46 }
0x17e0   :  { %v2142_v59 = vpop.f32.mrb[10].mxu1 }
0x17e1   :  { %v1396_v53 = vrot.slane %v1392_v49, %v1395_v48  ;;  %v1342_v60 = vpop.f32.mrb[11].mxu1 }
0x17e3   :  { %v2882_v54 = vadd.f32 %v1396_v53, %v2874_v50  ;;  %v2885_v55 = vadd.f32 %v1396_v53, %v2879_v52 }
0x17e5   :  { %v1402_v56 = vsel %vm1366_vm10, %v2882_v54, -inf  ;;  %v1399_v57 = vsel %vm1364_vm13, %v2885_v55, -inf }
0x17e6   :  { %1403 = vmax.xlane.f32.xlu1 %v1402_v56  ;;  %1400 = vmax.xlane.f32.xlu0 %v1399_v57 }
0x17f7   :  { %1267 = vperm.xlu1 %2228, %v1259_v58  }
0x17fb   :  { %2229 = vset.pattern.permute.xlu1 %v2403_v63 }
0x17fc   :  { %1262 = vperm.xlu0 %2227, %v1258_v61  }
0x1800   :  { %2231 = vset.pattern.permute.xlu0 %v2404_v37 }
0x1873   :  { %v2897_v0 = vpop.xlane.xlu1 %1403  ;;  %v2899_v1 = vpop.xlane.xlu0 %1400 }
0x1877   :  { %v1268_v9 = vpop.permute.xlu1 %1267 }
0x1878   :  { %v2903_v14 = vadd.f32 %v2142_v59, %v1268_v9  ;;  %v1569_v9 = vsub.s32 4, %v2841_v27 }
0x187a   :  { %v1440_v7 = vadd.f32 %v2897_v0, %v2903_v14 }
0x187b   :  { %v1263_v2 = vpop.permute.xlu0 %1262 }
0x187c   :  { %v2901_v5 = vadd.f32 %v1342_v60, %v1263_v2 }
0x187e   :  { %v1439_v6 = vadd.f32 %v2899_v1, %v2901_v5 }
0x1880   :  { %1443 = vperm.xlu1 %2229, %v1439_v6  }
0x1884   :  { %1448 = vperm.xlu1 %2229, %v1440_v7  }
0x1888   :  { %2230 = vset.pattern.permute.xlu1 %v2404_v37 }
0x18ff   :  { %v1444_v8 = vpop.permute.xlu1 %1443 }
0x1900   :  { %v1451_v10 = vadd.f32 %v1444_v8, %v2847_v30 }
0x1902   :  { %v1453_v4 = vsel %vm1364_vm13, %v1451_v10, -inf }
0x1903   :  { %v1449_v11 = vpop.permute.xlu1 %1448 }
0x1904   :  { %v1452_v15 = vadd.f32 %v1449_v11, %v2849_v31 }
0x1906   :  { %v1454_v16 = vsel %vm1366_vm10, %v1452_v15, -inf }
0x1907   :  { %v1455_v17 = vmax.f32 %v1453_v4, %v1454_v16 }
0x1909   :  { %v1456_v19 = vrot.slane %v1455_v17, 4 }
0x190b   :  { %v1457_v21 = vmax.f32 %v1455_v17, %v1456_v19 }
0x190d   :  { %v1458_v22 = vrot.slane %v1457_v21, 2 }
0x190f   :  { %v1459_v23 = vmax.f32 %v1457_v21, %v1458_v22  ;;  %v2405_v21 = vmov 5  }
0x1911   :  { %v1460_v12 = vrot.slane %v1459_v23, 1 }
0x1913   :  { %v1461_v24 = vmax.f32 %v1459_v23, %v1460_v12 }
0x1915   :  { %vm1462_vm15 = vcmp.eq.f32.partialorder %v1451_v10, %v1461_v24  ;;  %vm1463_vm11 = vcmp.eq.f32.partialorder %v1452_v15, %v1461_v24  ;;  %v1479_v25 = vadd.f32 %v1461_v24, %v2866_v46 }
0x1916   :  { %v1464_v28 = vsel %vm1462_vm15, %v2841_v27, 11  ;;  %v1465_v26 = vsel %vm1463_vm11, %v2844_v29, 11  ;;  %vm1712_vm11 = vcmask 64568  }
0x1917   :  { %v1466_v62 = vsel %vm1364_vm13, %v1464_v28, 2147483647  ;;  %v1467_v20 = vsel %vm1366_vm10, %v1465_v26, 2147483647  ;;  %v1483_v40 = vrot.slane %v1479_v25, %v1482_v51 }
0x1918   :  { %vm1468_vm2 = vcmp.lt.s32.totalorder %v1466_v62, %v1467_v20 }
0x1919   :  { %v2919_v32 = vsel %vm1468_vm2, %v1466_v62, %v1467_v20  ;;  %v2922_v18 = vadd.f32 %v1483_v40, %v2874_v50  ;;  %v2925_v3 = vadd.f32 %v1483_v40, %v2879_v52  ;;  %vm1714_vm2 = vcmask 59448  }
0x191b   :  { %v1489_v35 = vsel %vm1366_vm10, %v2922_v18, -inf  ;;  %v1486_v36 = vsel %vm1364_vm13, %v2925_v3, -inf }
0x191c   :  { %1490 = vmax.xlane.f32.xlu0 %v1489_v35  ;;  %1487 = vmax.xlane.f32.xlu1 %v1486_v36 }
0x19a9   :  { %v2931_v38 = vpop.xlane.xlu0 %1490  ;;  %v2933_v39 = vpop.xlane.xlu1 %1487 }
0x19aa   :  { %v1527_v41 = vadd.f32 %v2931_v38, %v2903_v14  ;;  %v1526_v42 = vadd.f32 %v2933_v39, %v2901_v5 }
0x19ac   :  { %1535 = vperm.xlu0 %2231, %v1527_v41   ;;  %1530 = vperm.xlu1 %2230, %v1526_v42  }
0x19b0   :  { %2232 = vset.pattern.permute.xlu1 %v2405_v21 }
0x1a2b   :  { %v1536_v43 = vpop.permute.xlu0 %1535  ;;  %v1531_v45 = vpop.permute.xlu1 %1530 }
0x1a2c   :  { %v1539_v47 = vadd.f32 %v1536_v43, %v2849_v31  ;;  %v1538_v48 = vadd.f32 %v1531_v45, %v2847_v30  ;;  %v1656_v45 = vsub.s32 6, %v2841_v27 }
0x1a2e   :  { %v1541_v49 = vsel %vm1366_vm10, %v1539_v47, -inf  ;;  %v1540_v53 = vsel %vm1364_vm13, %v1538_v48, -inf }
0x1a2f   :  { %v1542_v56 = vmax.f32 %v1540_v53, %v1541_v49 }
0x1a31   :  { %v1543_v57 = vrot.slane %v1542_v56, 4 }
0x1a33   :  { %v1544_v58 = vmax.f32 %v1542_v56, %v1543_v57 }
0x1a35   :  { %v1545_v59 = vrot.slane %v1544_v58, 2 }
0x1a37   :  { %v1546_v60 = vmax.f32 %v1544_v58, %v1545_v59 }
0x1a39   :  { %v1547_v61 = vrot.slane %v1546_v60, 1 }
0x1a3b   :  { %v1548_v63 = vmax.f32 %v1546_v60, %v1547_v61 }
0x1a3d   :  { %vm1549_vm4 = vcmp.eq.f32.partialorder %v1538_v48, %v1548_v63  ;;  %vm1550_vm9 = vcmp.eq.f32.partialorder %v1539_v47, %v1548_v63  ;;  %v1566_v2 = vadd.f32 %v1548_v63, %v2866_v46 }
0x1a3e   :  { %v1551_v6 = vsel %vm1549_vm4, %v2841_v27, 11  ;;  %v1552_v7 = vsel %vm1550_vm9, %v2844_v29, 11 }
0x1a3f   :  { %v1553_v8 = vsel %vm1364_vm13, %v1551_v6, 2147483647  ;;  %v1554_v10 = vsel %vm1366_vm10, %v1552_v7, 2147483647  ;;  %v1570_v11 = vrot.slane %v1566_v2, %v1569_v9 }
0x1a40   :  { %vm1555_vm0 = vcmp.lt.s32.totalorder %v1553_v8, %v1554_v10 }
0x1a41   :  { %v2949_v15 = vsel %vm1555_vm0, %v1553_v8, %v1554_v10  ;;  %v2952_v4 = vadd.f32 %v1570_v11, %v2874_v50  ;;  %v2955_v16 = vadd.f32 %v1570_v11, %v2879_v52 }
0x1a43   :  { %v1576_v17 = vsel %vm1366_vm10, %v2952_v4, -inf  ;;  %v1573_v19 = vsel %vm1364_vm13, %v2955_v16, -inf }
0x1a44   :  { %1577 = vmax.xlane.f32.xlu0 %v1576_v17  ;;  %1574 = vmax.xlane.f32.xlu1 %v1573_v19 }
0x1ad1   :  { %v2961_v22 = vpop.xlane.xlu1 %1574  ;;  %v1578_v12 = vpop.xlane.xlu0 %1577 }
0x1ad2   :  { %v1613_v23 = vadd.f32 %v2961_v22, %v2901_v5  ;;  %v1614_v24 = vadd.f32 %v1578_v12, %v2903_v14  ;;  %vm1580_vm6 = vcmp.eq.f32.partialorder %v2952_v4, %v1578_v12  ;;  %v2407_v12 = vmov 7  }
0x1ad3   :  { %v1582_v17 = vsel %vm1580_vm6, %v2535_v13, 11  ;;  %2233 = vset.pattern.permute.xlu0 %v2407_v12 }
0x1ad4   :  { %1617 = vperm.xlu1 %2232, %v1613_v23  }
0x1ad8   :  { %1622 = vperm.xlu1 %2232, %v1614_v24  }
0x1adc   :  { %2234 = vset.pattern.permute.xlu1 %v2407_v12 }
0x1b53   :  { %v1618_v51 = vpop.permute.xlu1 %1617 }
0x1b54   :  { %v1625_v25 = vadd.f32 %v1618_v51, %v2847_v30  ;;  %v2991_v51 = vsel %vm1366_vm10, %v1582_v17, 2147483647 }
0x1b56   :  { %v1627_v62 = vsel %vm1364_vm13, %v1625_v25, -inf }
0x1b57   :  { %v1623_v28 = vpop.permute.xlu1 %1622 }
0x1b58   :  { %v1626_v26 = vadd.f32 %v1623_v28, %v2849_v31 }
0x1b5a   :  { %v1628_v20 = vsel %vm1366_vm10, %v1626_v26, -inf }
0x1b5b   :  { %v1629_v40 = vmax.f32 %v1627_v62, %v1628_v20 }
0x1b5d   :  { %v1630_v35 = vrot.slane %v1629_v40, 4 }
0x1b5f   :  { %v1631_v36 = vmax.f32 %v1629_v40, %v1630_v35 }
0x1b61   :  { %v1632_v37 = vrot.slane %v1631_v36, 2 }
0x1b63   :  { %v1633_v41 = vmax.f32 %v1631_v36, %v1632_v37 }
0x1b65   :  { %v1634_v42 = vrot.slane %v1633_v41, 1 }
0x1b67   :  { %v1635_v43 = vmax.f32 %v1633_v41, %v1634_v42 }
0x1b69   :  { %vm1636_vm1 = vcmp.eq.f32.partialorder %v1625_v25, %v1635_v43  ;;  %vm1637_vm3 = vcmp.eq.f32.partialorder %v1626_v26, %v1635_v43  ;;  %v1653_v47 = vadd.f32 %v1635_v43, %v2866_v46  ;;  %v1600_v26 = vshra.s32 %v2991_v51, 16 }
0x1b6a   :  { %v1638_v48 = vsel %vm1636_vm1, %v2841_v27, 11  ;;  %v1639_v49 = vsel %vm1637_vm3, %v2844_v29, 11 }
0x1b6b   :  { %v1640_v53 = vsel %vm1364_vm13, %v1638_v48, 2147483647  ;;  %v1641_v56 = vsel %vm1366_vm10, %v1639_v49, 2147483647  ;;  %v1657_v57 = vrot.slane %v1653_v47, %v1656_v45  ;;  %v2994_v4 = vcvt.s32.f32 %v1600_v26 }
0x1b6c   :  { %vm1642_vm5 = vcmp.lt.s32.totalorder %v1640_v53, %v1641_v56 }
0x1b6d   :  { %v2976_v58 = vsel %vm1642_vm5, %v1640_v53, %v1641_v56  ;;  %v1659_v59 = vadd.f32 %v1657_v57, %v2874_v50  ;;  %v1658_v60 = vadd.f32 %v1657_v57, %v2879_v52 }
0x1b6f   :  { %v1663_v61 = vsel %vm1366_vm10, %v1659_v59, -inf  ;;  %v1660_v46 = vsel %vm1364_vm13, %v1658_v60, -inf }
0x1b70   :  { %1664 = vmax.xlane.f32.xlu0 %v1663_v61  ;;  %1661 = vmax.xlane.f32.xlu1 %v1660_v46 }
0x1b81   :  { %1706 = vrot.lane.b32.xlu1 %v2849_v31, %s2406_s7 }
0x1bfd   :  { %v1665_v63 = vpop.xlane.xlu0 %1664  ;;  %v1662_v9 = vpop.xlane.xlu1 %1661 }
0x1bfe   :  { %vm1667_vm8 = vcmp.eq.f32.partialorder %v1659_v59, %v1665_v63  ;;  %vm1666_vm12 = vcmp.eq.f32.partialorder %v1658_v60, %v1662_v9  ;;  %v1700_v20 = vadd.f32 %v1662_v9, %v2901_v5  ;;  %v1701_v35 = vadd.f32 %v1665_v63, %v2903_v14 }
0x1bff   :  { %v1669_v2 = vsel %vm1667_vm8, %v2535_v13, 11  ;;  %v1668_v6 = vsel %vm1666_vm12, %v2535_v13, 11 }
0x1c00   :  { %v1670_v50 = vsel %vm1364_vm13, %v1668_v6, 2147483647  ;;  %v1685_v52 = vsel %vm1366_vm10, %v1669_v2, 2147483647 }
0x1c01   :  { %v1672_v7 = vshra.s32 %v1670_v50, 16  ;;  %v1687_v10 = vshra.s32 %v1685_v52, 16  ;;  %v1671_v31 = vand.u32 65535, %v1670_v50  ;;  %v1686_v23 = vand.u32 65535, %v1685_v52  ;;  %v1707_v40 = vpop.permute.xlu1 %1706 }
0x1c02   :  { %v1711_v37 = vadd.f32 %v1707_v40, %v1701_v35 }
0x1c03   :  { %v1674_v8 = vcvt.s32.f32 %v1672_v7  ;;  %v1689_v11 = vcvt.s32.f32 %v1687_v10  ;;  %v1673_v21 = vcvt.s32.f32 %v1671_v31  ;;  %v1688_v28 = vcvt.s32.f32 %v1686_v23 }
0x1c04   :  { %v1715_v42 = vsel %vm1714_vm2, %v1711_v37, -inf }
0x1c05   :  { %1675 = vmin.xlane.f32.xlu0 %v1674_v8 }
0x1c09   :  { %1690 = vmin.xlane.f32.xlu0 %v1689_v11 }
0x1c1f   :  { %1704 = vrot.lane.b32.xlu0 %v2847_v30, %s2406_s7 }
0x1c92   :  { %v1676_v19 = vpop.xlane.xlu0 %1675 }
0x1c93   :  { %vm1677_vm7 = vcmp.eq.f32.partialorder %v1674_v8, %v1676_v19  ;;  %v1682_v6 = vcvt.f32.s32 %v1676_v19 }
0x1c94   :  { %v1678_v24 = vsel %vm1677_vm7, %v1673_v21, inf }
0x1c95   :  { %1679 = vmin.xlane.f32.xlu0 %v1678_v24  ;;  %v1683_v52 = vshll.u32 %v1682_v6, 16 }
0x1c96   :  { %v1691_v25 = vpop.xlane.xlu0 %1690 }
0x1c97   :  { %vm1692_vm15 = vcmp.eq.f32.partialorder %v1689_v11, %v1691_v25  ;;  %v1697_v7 = vcvt.f32.s32 %v1691_v25 }
0x1c98   :  { %v1693_v30 = vsel %vm1692_vm15, %v1688_v28, inf }
0x1c99   :  { %1694 = vmin.xlane.f32.xlu1 %v1693_v30  ;;  %v1698_v17 = vshll.u32 %v1697_v7, 16 }
0x1c9a   :  { %v1705_v62 = vpop.permute.xlu0 %1704 }
0x1c9b   :  { %v1710_v36 = vadd.f32 %v1705_v62, %v1700_v20 }
0x1c9d   :  { %1603 = vmin.xlane.f32.xlu1 %v2994_v4  ;;  %v1713_v41 = vsel %vm1712_vm11, %v1710_v36, -inf }
0x1c9e   :  { %v1716_v43 = vmax.f32 %v1713_v41, %v1715_v42 }
0x1ca0   :  { %v1717_v45 = vrot.slane %v1716_v43, 4 }
0x1ca2   :  { %v1718_v47 = vmax.f32 %v1716_v43, %v1717_v45  ;;  %v1644_v43 = vrot.slane %v2976_v58, 4 }
0x1ca4   :  { %v1719_v48 = vrot.slane %v1718_v47, 2 }
0x1ca6   :  { %v1720_v49 = vmax.f32 %v1718_v47, %v1719_v48 }
0x1ca8   :  { %v1721_v53 = vrot.slane %v1720_v49, 1 }
0x1caa   :  { %v3001_v56 = vmax.f32 %v1720_v49, %v1721_v53 }
0x1cac   :  { %vm1723_vm4 = vcmp.eq.f32.partialorder %v1710_v36, %v3001_v56  ;;  %vm1724_vm9 = vcmp.eq.f32.partialorder %v1711_v37, %v3001_v56 }
0x1cad   :  { %v1725_v5 = vsel %vm1723_vm4, %v2841_v27, 11  ;;  %v1726_v14 = vsel %vm1724_vm9, %v2844_v29, 11  ;;  %vm1492_vm9 = vcmp.eq.f32.partialorder %v2925_v3, %v2933_v39 }
0x1cae   :  { %v1727_v57 = vsel %vm1712_vm11, %v1725_v5, 2147483647  ;;  %v1728_v59 = vsel %vm1714_vm2, %v1726_v14, 2147483647  ;;  %v1494_v36 = vsel %vm1492_vm9, %v2535_v13, 11 }
0x1caf   :  { %vm1729_vm0 = vcmp.lt.s32.totalorder %v1727_v57, %v1728_v59  ;;  %v3021_v37 = vsel %vm1364_vm13, %v1494_v36, 2147483647 }
0x1cb0   :  { %v1730_v60 = vsel %vm1729_vm0, %v1727_v57, %v1728_v59  ;;  %v1498_v41 = vshra.s32 %v3021_v37, 16  ;;  %vm1579_vm0 = vcmp.eq.f32.partialorder %v2955_v16, %v2961_v22  ;;  %v1599_v16 = vand.u32 65535, %v2991_v51 }
0x1cb1   :  { %v1731_v61 = vrot.slane %v1730_v60, 4  ;;  %v1581_v48 = vsel %vm1579_vm0, %v2535_v13, 11  ;;  %vm1493_vm0 = vcmp.eq.f32.partialorder %v2922_v18, %v2931_v38 }
0x1cb2   :  { %v3024_v42 = vcvt.s32.f32 %v1498_v41 }
0x1cb3   :  { %vm1732_vm1 = vcmp.lt.s32.totalorder %v1730_v60, %v1731_v61 }
0x1cb4   :  { %v1733_v46 = vsel %vm1732_vm1, %v1730_v60, %v1731_v61 }
0x1cb5   :  { %v1734_v63 = vrot.slane %v1733_v46, 2 }
0x1cb7   :  { %vm1735_vm3 = vcmp.lt.s32.totalorder %v1733_v46, %v1734_v63 }
0x1cb8   :  { %v1736_v9 = vsel %vm1735_vm3, %v1733_v46, %v1734_v63  ;;  %v1601_v46 = vcvt.s32.f32 %v1599_v16 }
0x1cb9   :  { %v1737_v2 = vrot.slane %v1736_v9, 1 }
0x1cbb   :  { %vm1738_vm5 = vcmp.lt.s32.totalorder %v1736_v9, %v1737_v2 }
0x1cbc   :  { %v3009_v11 = vsel %vm1738_vm5, %v1736_v9, %v1737_v2 }
0x1cbd   :  { %vm1745_vm8 = vcmp.eq.s32.totalorder %v2841_v27, %v3009_v11  ;;  %vm1746_vm12 = vcmp.eq.s32.totalorder %v2844_v29, %v3009_v11 }
0x1d22   :  { %v1680_v50 = vpop.xlane.xlu0 %1679 }
0x1d23   :  { %v1681_v8 = vcvt.f32.s32 %v1680_v50 }
0x1d25   :  { %v1684_v10 = vadd.s32 %v1683_v52, %v1681_v8 }
0x1d26   :  { %v1695_v31 = vpop.xlane.xlu1 %1694 }
0x1d27   :  { %v1696_v21 = vcvt.f32.s32 %v1695_v31  ;;  %v1747_v23 = vsel %vm1745_vm8, %v1684_v10, 11  ;;  %v1557_v31 = vrot.slane %v2949_v15, 4 }
0x1d28   :  { %v1749_v28 = vsel %vm1712_vm11, %v1747_v23, 2147483647  ;;  %vm1645_vm11 = vcmp.lt.s32.totalorder %v2976_v58, %v1644_v43 }
0x1d29   :  { %v1699_v24 = vadd.s32 %v1698_v17, %v1696_v21  ;;  %v1646_v45 = vsel %vm1645_vm11, %v2976_v58, %v1644_v43  ;;  %v1583_v58 = vsel %vm1364_vm13, %v1581_v48, 2147483647 }
0x1d2a   :  { %v1647_v47 = vrot.slane %v1646_v45, 2  ;;  %v1585_v60 = vshra.s32 %v1583_v58, 16  ;;  %v1604_v61 = vpop.xlane.xlu1 %1603  ;;  %v1584_v50 = vand.u32 65535, %v1583_v58  ;;  %v1495_v58 = vsel %vm1493_vm0, %v2535_v13, 11 }
0x1d2b   :  { %v1748_v19 = vsel %vm1746_vm12, %v1699_v24, 11  ;;  %vm1605_vm5 = vcmp.eq.f32.partialorder %v2994_v4, %v1604_v61  ;;  %v1610_v4 = vcvt.f32.s32 %v1604_v61  ;;  %v1511_v16 = vsel %vm1366_vm10, %v1495_v58, 2147483647 }
0x1d2c   :  { %v1750_v25 = vsel %vm1714_vm2, %v1748_v19, 2147483647  ;;  %vm1648_vm2 = vcmp.lt.s32.totalorder %v1646_v45, %v1647_v47  ;;  %v1587_v22 = vcvt.s32.f32 %v1585_v60  ;;  %v1606_v63 = vsel %vm1605_vm5, %v1601_v46, inf }
0x1d2d   :  { %vm1751_vm6 = vcmp.lt.s32.totalorder %v1749_v28, %v1750_v25  ;;  %v1649_v3 = vsel %vm1648_vm2, %v1646_v45, %v1647_v47  ;;  %v1586_v8 = vcvt.s32.f32 %v1584_v50 }
0x1d2e   :  { %v1752_v26 = vsel %vm1751_vm6, %v1749_v28, %v1750_v25  ;;  %v1650_v39 = vrot.slane %v1649_v3, 1  ;;  %vm1558_vm6 = vcmp.lt.s32.totalorder %v2949_v15, %v1557_v31  ;;  %v1611_v25 = vshll.u32 %v1610_v4, 16 }
0x1d2f   :  { %v1753_v30 = vrot.slane %v1752_v26, 4 }
0x1d30   :  { %vm1651_vm1 = vcmp.lt.s32.totalorder %v1649_v3, %v1650_v39 }
0x1d31   :  { %vm1754_vm7 = vcmp.lt.s32.totalorder %v1752_v26, %v1753_v30  ;;  %v1652_v53 = vsel %vm1651_vm1, %v1649_v3, %v1650_v39 }
0x1d32   :  { %v1755_v12 = vsel %vm1754_vm7, %v1752_v26, %v1753_v30  ;;  %v1559_v30 = vsel %vm1558_vm6, %v2949_v15, %v1557_v31 }
0x1d33   :  { %v1756_v62 = vrot.slane %v1755_v12, 2  ;;  %v1560_v36 = vrot.slane %v1559_v30, 2 }
0x1d35   :  { %vm1757_vm15 = vcmp.lt.s32.totalorder %v1755_v12, %v1756_v62  ;;  %vm1561_vm9 = vcmp.lt.s32.totalorder %v1559_v30, %v1560_v36 }
0x1d36   :  { %v1758_v20 = vsel %vm1757_vm15, %v1755_v12, %v1756_v62  ;;  %v1562_v3 = vsel %vm1561_vm9, %v1559_v30, %v1560_v36 }
0x1d37   :  { %v1759_v40 = vrot.slane %v1758_v20, 1 }
0x1d39   :  { %vm1760_vm4 = vcmp.lt.s32.totalorder %v1758_v20, %v1759_v40 }
0x1d3a   :  { %v1761_v35 = vsel %vm1760_vm4, %v1758_v20, %v1759_v40 }
0x1d3b   :  { %1764 = vperm.xlu0 %2233, %v1761_v35  }
0x1d5a   :  { %1501 = vmin.xlane.f32.xlu0 %v3024_v42 }
0x1dba   :  { %v3033_v49 = vpop.permute.xlu0 %1764 }
0x1dbb   :  { %vm1767_vm3 = vcmp.eq.s32.totalorder %v2535_v13, %v3033_v49 }
0x1dbc   :  { %v1768_v5 = vsel %vm1767_vm3, %v1652_v53, 11  ;;  %v1563_v53 = vrot.slane %v1562_v3, 1 }
0x1dbd   :  { %v1769_v14 = vsel %vm1364_vm13, %v1768_v5, 2147483647 }
0x1dbe   :  { %v1771_v57 = vshra.s32 %v1769_v14, 16  ;;  %v1770_v9 = vand.u32 65535, %v1769_v14  ;;  %vm1564_vm1 = vcmp.lt.s32.totalorder %v1562_v3, %v1563_v53 }
0x1dc0   :  { %v1773_v59 = vcvt.s32.f32 %v1771_v57  ;;  %v1772_v6 = vcvt.s32.f32 %v1770_v9  ;;  %v1512_v9 = vand.u32 65535, %v1511_v16 }
0x1dc2   :  { %1774 = vmin.xlane.f32.xlu1 %v1773_v59 }
0x1dc6   :  { %1588 = vmin.xlane.f32.xlu1 %v1587_v22 }
0x1dca   :  { %1607 = vmin.xlane.f32.xlu1 %v1606_v63  ;;  %v1513_v63 = vshra.s32 %v1511_v16, 16 }
0x1dcc   :  { %v1515_v18 = vcvt.s32.f32 %v1513_v63 }
0x1e4f   :  { %v1775_v2 = vpop.xlane.xlu1 %1774 }
0x1e50   :  { %vm1776_vm8 = vcmp.eq.f32.partialorder %v1773_v59, %v1775_v2  ;;  %v1781_v17 = vcvt.f32.s32 %v1775_v2  ;;  %v1565_v59 = vsel %vm1564_vm1, %v1562_v3, %v1563_v53 }
0x1e51   :  { %v1777_v52 = vsel %vm1776_vm8, %v1772_v6, inf  ;;  %vm1406_vm8 = vcmp.eq.f32.partialorder %v2882_v54, %v2897_v0  ;;  %v1514_v6 = vcvt.s32.f32 %v1512_v9 }
0x1e52   :  { %1778 = vmin.xlane.f32.xlu1 %v1777_v52  ;;  %v1782_v24 = vshll.u32 %v1781_v17, 16 }
0x1e53   :  { %v1589_v7 = vpop.xlane.xlu1 %1588 }
0x1e54   :  { %vm1590_vm12 = vcmp.eq.f32.partialorder %v1587_v22, %v1589_v7  ;;  %v1595_v19 = vcvt.f32.s32 %v1589_v7  ;;  %v1408_v7 = vsel %vm1406_vm8, %v2535_v13, 11 }
0x1e55   :  { %v1591_v10 = vsel %vm1590_vm12, %v1586_v8, inf  ;;  %v1502_v8 = vpop.xlane.xlu0 %1501  ;;  %v3065_v17 = vsel %vm1366_vm10, %v1408_v7, 2147483647 }
0x1e56   :  { %1592 = vmin.xlane.f32.xlu1 %v1591_v10  ;;  %v1596_v20 = vshll.u32 %v1595_v19, 16  ;;  %v1426_v0 = vshra.s32 %v3065_v17, 16  ;;  %v1508_v30 = vcvt.f32.s32 %v1502_v8 }
0x1e57   :  { %v1608_v51 = vpop.xlane.xlu1 %1607 }
0x1e58   :  { %v1609_v21 = vcvt.f32.s32 %v1608_v51  ;;  %v1497_v51 = vand.u32 65535, %v3021_v37 }
0x1e5a   :  { %v1612_v12 = vadd.s32 %v1611_v25, %v1609_v21  ;;  %v1499_v54 = vcvt.s32.f32 %v1497_v51  ;;  %v3069_v21 = vcvt.s32.f32 %v1426_v0 }
0x1edf   :  { %v1779_v23 = vpop.xlane.xlu1 %1778 }
0x1ee0   :  { %v1780_v28 = vcvt.f32.s32 %v1779_v23 }
0x1ee2   :  { %v3043_v26 = vadd.s32 %v1782_v24, %v1780_v28  ;;  %v1470_v24 = vrot.slane %v2919_v32, 4 }
0x1ee3   :  { %v1593_v62 = vpop.xlane.xlu1 %1592 }
0x1ee4   :  { %vm1787_vm7 = vcmp.eq.s32.totalorder %v2844_v29, %v3043_v26  ;;  %v1594_v40 = vcvt.f32.s32 %v1593_v62  ;;  %vm1786_vm15 = vcmp.eq.s32.totalorder %v2841_v27, %v3043_v26 }
0x1ee5   :  { %v1789_v35 = vsel %vm1787_vm7, %v1612_v12, 11  ;;  %vm1503_vm7 = vcmp.eq.f32.partialorder %v3024_v42, %v1502_v8  ;;  %v1425_v8 = vand.u32 65535, %v3065_v17 }
0x1ee6   :  { %v1597_v41 = vadd.s32 %v1596_v20, %v1594_v40  ;;  %v1790_v43 = vsel %vm173_vm14, %v1789_v35, 2147483647  ;;  %v1504_v4 = vsel %vm1503_vm7, %v1499_v54, inf }
0x1ee7   :  { %v1427_v54 = vcvt.s32.f32 %v1425_v8 }
0x1ee8   :  { %v1788_v45 = vsel %vm1786_vm15, %v1597_v41, 11  ;;  %vm1471_vm15 = vcmp.lt.s32.totalorder %v2919_v32, %v1470_v24  ;;  %v1509_v41 = vshll.u32 %v1508_v30, 16 }
0x1ee9   :  { %vm1791_vm4 = vcmp.lt.s32.totalorder %v1788_v45, %v1790_v43  ;;  %v1472_v40 = vsel %vm1471_vm15, %v2919_v32, %v1470_v24 }
0x1eea   :  { %v1792_v47 = vsel %vm1791_vm4, %v1788_v45, %v1790_v43 }
0x1eeb   :  { %v1793_v15 = vrot.slane %v1792_v47, 4 }
0x1eed   :  { %vm1794_vm11 = vcmp.lt.s32.totalorder %v1792_v47, %v1793_v15 }
0x1eee   :  { %v1795_v39 = vsel %vm1794_vm11, %v1792_v47, %v1793_v15  ;;  %v1473_v47 = vrot.slane %v1472_v40, 2 }
0x1eef   :  { %v1796_v48 = vrot.slane %v1795_v39, 2 }
0x1ef1   :  { %vm1797_vm2 = vcmp.lt.s32.totalorder %v1795_v39, %v1796_v48 }
0x1ef2   :  { %v1798_v5 = vsel %vm1797_vm2, %v1795_v39, %v1796_v48  ;;  %vm1474_vm2 = vcmp.lt.s32.totalorder %v1472_v40, %v1473_v47 }
0x1ef3   :  { %v1799_v14 = vrot.slane %v1798_v5, 1  ;;  %v1475_v53 = vsel %vm1474_vm2, %v1472_v40, %v1473_v47 }
0x1ef4   :  { %v1476_v58 = vrot.slane %v1475_v53, 1 }
0x1ef5   :  { %vm1800_vm3 = vcmp.lt.s32.totalorder %v1798_v5, %v1799_v14 }
0x1ef6   :  { %v3054_v57 = vsel %vm1800_vm3, %v1798_v5, %v1799_v14  ;;  %vm1405_vm3 = vcmp.eq.f32.partialorder %v2885_v55, %v2899_v1 }
0x1ef7   :  { %vm1804_vm5 = vcmp.eq.s32.totalorder %v2535_v13, %v3054_v57 }
0x1ef8   :  { %v1805_v60 = vsel %vm1804_vm5, %v1565_v59, 11  ;;  %vm1477_vm5 = vcmp.lt.s32.totalorder %v1475_v53, %v1476_v58 }
0x1ef9   :  { %v1806_v61 = vsel %vm1364_vm13, %v1805_v60, 2147483647 }
0x1efa   :  { %v1808_v22 = vshra.s32 %v1806_v61, 16  ;;  %v1807_v50 = vand.u32 65535, %v1806_v61  ;;  %v1407_v61 = vsel %vm1405_vm3, %v2535_v13, 11 }
0x1efc   :  { %v1810_v46 = vcvt.s32.f32 %v1808_v22  ;;  %v1809_v10 = vcvt.s32.f32 %v1807_v50  ;;  %v1478_v22 = vsel %vm1477_vm5, %v1475_v53, %v1476_v58 }
0x1efe   :  { %1811 = vmin.xlane.f32.xlu1 %v1810_v46 }
0x1f02   :  { %1516 = vmin.xlane.f32.xlu1 %v1515_v18 }
0x1f8b   :  { %v1812_v38 = vpop.xlane.xlu1 %1811 }
0x1f8c   :  { %vm1813_vm6 = vcmp.eq.f32.partialorder %v1810_v46, %v1812_v38  ;;  %v1818_v37 = vcvt.f32.s32 %v1812_v38 }
0x1f8d   :  { %v1814_v31 = vsel %vm1813_vm6, %v1809_v10, inf }
0x1f8e   :  { %v1819_v42 = vshll.u32 %v1818_v37, 16 }
0x1f8f   :  { %v1517_v2 = vpop.xlane.xlu1 %1516 }
0x1f90   :  { %vm1518_vm12 = vcmp.eq.f32.partialorder %v1515_v18, %v1517_v2  ;;  %v1523_v19 = vcvt.f32.s32 %v1517_v2  ;;  %v1409_v18 = vsel %vm1364_vm13, %v1407_v61, 2147483647 }
0x1f91   :  { %v1519_v52 = vsel %vm1518_vm12, %v1514_v6, inf  ;;  %v1411_v2 = vshra.s32 %v1409_v18, 16  ;;  %v1410_v7 = vand.u32 65535, %v1409_v18 }
0x1f92   :  { %1520 = vmin.xlane.f32.xlu1 %v1519_v52  ;;  %v1524_v62 = vshll.u32 %v1523_v19, 16 }
0x1f93   :  { %v1413_v55 = vcvt.s32.f32 %v1411_v2 }
0x1f96   :  { %1815 = vmin.xlane.f32.xlu1 %v1814_v31  ;;  %v1412_v31 = vcvt.s32.f32 %v1410_v7 }
0x1f9a   :  { %1505 = vmin.xlane.f32.xlu1 %v1504_v4 }
0x1f9e   :  { %1429 = vmin.xlane.f32.xlu1 %v3069_v21 }
0x201f   :  { %v1521_v23 = vpop.xlane.xlu1 %1520 }
0x2020   :  { %v1522_v28 = vcvt.f32.s32 %v1521_v23 }
0x2022   :  { %v1525_v35 = vadd.s32 %v1524_v62, %v1522_v28 }
0x2023   :  { %v1816_v25 = vpop.xlane.xlu1 %1815 }
0x2024   :  { %v1817_v12 = vcvt.f32.s32 %v1816_v25 }
0x2026   :  { %v3074_v20 = vadd.s32 %v1819_v42, %v1817_v12 }
0x2027   :  { %v1506_v36 = vpop.xlane.xlu1 %1505 }
0x2028   :  { %vm1824_vm4 = vcmp.eq.s32.totalorder %v2844_v29, %v3074_v20  ;;  %v1507_v43 = vcvt.f32.s32 %v1506_v36  ;;  %vm1823_vm9 = vcmp.eq.s32.totalorder %v2841_v27, %v3074_v20 }
0x2029   :  { %v1826_v45 = vsel %vm1824_vm4, %v1525_v35, 11  ;;  %vm1375_vm4 = vcmp.eq.f32.partialorder %v2852_v33, %v2864_v44 }
0x202a   :  { %v1510_v15 = vadd.s32 %v1509_v41, %v1507_v43  ;;  %v1827_v3 = vsel %vm173_vm14, %v1826_v45, 2147483647  ;;  %v1377_v17 = vsel %vm1375_vm4, %v2841_v27, 11  ;;  %vm1762_vm4 = vcmp.eq.s32.totalorder %v2535_v13, 6 }
0x202b   :  { %v1430_v1 = vpop.xlane.xlu1 %1429 }
0x202c   :  { %v1825_v39 = vsel %vm1823_vm9, %v1510_v15, 11  ;;  %vm1431_vm7 = vcmp.eq.f32.partialorder %v3069_v21, %v1430_v1  ;;  %vm1376_vm9 = vcmp.eq.f32.partialorder %v2855_v34, %v2864_v44  ;;  %v1379_v21 = vsel %vm1364_vm13, %v1377_v17, 2147483647 }
0x202d   :  { %vm1828_vm11 = vcmp.lt.s32.totalorder %v1825_v39, %v1827_v3  ;;  %v1432_v4 = vsel %vm1431_vm7, %v1427_v54, inf  ;;  %v1378_v23 = vsel %vm1376_vm9, %v2844_v29, 11  ;;  %v1436_v30 = vcvt.f32.s32 %v1430_v1 }
0x202e   :  { %v1829_v48 = vsel %vm1828_vm11, %v1825_v39, %v1827_v3  ;;  %v1380_v24 = vsel %vm1366_vm10, %v1378_v23, 2147483647  ;;  %vm1802_vm9 = vcmp.eq.s32.totalorder %v2535_v13, 4 }
0x202f   :  { %v1830_v32 = vrot.slane %v1829_v48, 4  ;;  %vm1381_vm11 = vcmp.lt.s32.totalorder %v1379_v21, %v1380_v24  ;;  %v1437_v35 = vshll.u32 %v1436_v30, 16 }
0x2030   :  { %v1382_v37 = vsel %vm1381_vm11, %v1379_v21, %v1380_v24  ;;  %vm1821_vm11 = vcmp.eq.s32.totalorder %v2535_v13, 3 }
0x2031   :  { %vm1831_vm0 = vcmp.lt.s32.totalorder %v1829_v48, %v1830_v32  ;;  %v1383_v19 = vrot.slane %v1382_v37, 4 }
0x2032   :  { %v1832_v5 = vsel %vm1831_vm0, %v1829_v48, %v1830_v32 }
0x2033   :  { %v1833_v14 = vrot.slane %v1832_v5, 2  ;;  %vm1384_vm2 = vcmp.lt.s32.totalorder %v1382_v37, %v1383_v19 }
0x2034   :  { %v1385_v62 = vsel %vm1384_vm2, %v1382_v37, %v1383_v19  ;;  %vm1839_vm2 = vcmp.eq.s32.totalorder %v2535_v13, 2 }
0x2035   :  { %vm1834_vm1 = vcmp.lt.s32.totalorder %v1832_v5, %v1833_v14  ;;  %v1386_v45 = vrot.slane %v1385_v62, 2 }
0x2036   :  { %v1835_v59 = vsel %vm1834_vm1, %v1832_v5, %v1833_v14 }
0x2037   :  { %v1836_v60 = vrot.slane %v1835_v59, 1  ;;  %vm1387_vm1 = vcmp.lt.s32.totalorder %v1385_v62, %v1386_v45 }
0x2038   :  { %v1388_v5 = vsel %vm1387_vm1, %v1385_v62, %v1386_v45  ;;  %vm1895_vm1 = vcmp.eq.s32.totalorder %v2535_v13, 8 }
0x2039   :  { %vm1837_vm8 = vcmp.lt.s32.totalorder %v1835_v59, %v1836_v60  ;;  %v1389_v58 = vrot.slane %v1388_v5, 1 }
0x203a   :  { %v3085_v16 = vsel %vm1837_vm8, %v1835_v59, %v1836_v60 }
0x203b   :  { %vm1841_vm12 = vcmp.eq.s32.totalorder %v2535_v13, %v3085_v16 }
0x203c   :  { %v1842_v46 = vsel %vm1841_vm12, %v1478_v22, 11  ;;  %vm1390_vm12 = vcmp.lt.s32.totalorder %v1388_v5, %v1389_v58 }
0x203d   :  { %v1843_v63 = vsel %vm1364_vm13, %v1842_v46, 2147483647  ;;  %v1391_v61 = vsel %vm1390_vm12, %v1388_v5, %v1389_v58 }
0x203e   :  { %v1845_v38 = vshra.s32 %v1843_v63, 16  ;;  %v1844_v6 = vand.u32 65535, %v1843_v63 }
0x2040   :  { %v1847_v9 = vcvt.s32.f32 %v1845_v38  ;;  %v1846_v52 = vcvt.s32.f32 %v1844_v6 }
0x2042   :  { %1848 = vmin.xlane.f32.xlu1 %v1847_v9 }
0x2046   :  { %1414 = vmin.xlane.f32.xlu1 %v1413_v55 }
0x20cf   :  { %v1849_v50 = vpop.xlane.xlu1 %1848 }
0x20d0   :  { %vm1850_vm6 = vcmp.eq.f32.partialorder %v1847_v9, %v1849_v50  ;;  %v1855_v28 = vcvt.f32.s32 %v1849_v50 }
0x20d1   :  { %v1851_v10 = vsel %vm1850_vm6, %v1846_v52, inf }
0x20d2   :  { %1852 = vmin.xlane.f32.xlu1 %v1851_v10  ;;  %v1856_v12 = vshll.u32 %v1855_v28, 16 }
0x20d3   :  { %v1415_v51 = vpop.xlane.xlu1 %1414 }
0x20d4   :  { %vm1416_vm15 = vcmp.eq.f32.partialorder %v1413_v55, %v1415_v51  ;;  %v1421_v42 = vcvt.f32.s32 %v1415_v51 }
0x20d5   :  { %v1417_v0 = vsel %vm1416_vm15, %v1412_v31, inf  ;;  %vm1740_vm15 = vcmp.eq.s32.totalorder %v2535_v13, 7 }
0x20d6   :  { %1418 = vmin.xlane.f32.xlu0 %v1417_v0  ;;  %1433 = vmin.xlane.f32.xlu1 %v1432_v4  ;;  %v1422_v36 = vshll.u32 %v1421_v42, 16 }
0x215f   :  { %v1853_v25 = vpop.xlane.xlu1 %1852 }
0x2160   :  { %v1854_v33 = vcvt.f32.s32 %v1853_v25 }
0x2162   :  { %v3101_v34 = vadd.s32 %v1856_v12, %v1854_v33 }
0x2163   :  { %v1419_v44 = vpop.xlane.xlu0 %1418  ;;  %v1434_v40 = vpop.xlane.xlu1 %1433 }
0x2164   :  { %v1420_v41 = vcvt.f32.s32 %v1419_v44  ;;  %v1435_v43 = vcvt.f32.s32 %v1434_v40  ;;  %vm1860_vm10 = vcmp.eq.s32.totalorder %v2841_v27, %v3101_v34  ;;  %vm1861_vm0 = vcmp.eq.s32.totalorder %v2844_v29, %v3101_v34 }
0x2166   :  { %v1423_v47 = vadd.s32 %v1422_v36, %v1420_v41  ;;  %v1438_v15 = vadd.s32 %v1437_v35, %v1435_v43 }
0x2168   :  { %v1862_v3 = vsel %vm1860_vm10, %v1423_v47, 11  ;;  %v1863_v39 = vsel %vm1861_vm0, %v1438_v15, 11  ;;  %vm1858_vm10 = vcmp.eq.s32.totalorder %v2535_v13, 1  ;;  %vm1876_vm0 = vcmp.eq.s32.totalorder %v2535_v13, 0 }
0x2169   :  { %v1864_v48 = vsel %vm173_vm14, %v1863_v39, 2147483647 }
0x216a   :  { %vm1865_vm3 = vcmp.lt.s32.totalorder %v1862_v3, %v1864_v48 }
0x216b   :  { %v1866_v32 = vsel %vm1865_vm3, %v1862_v3, %v1864_v48  ;;  %vm1898_vm3 = vcmp.eq.s32.totalorder %v2535_v13, 9 }
0x216c   :  { %v1867_v53 = vrot.slane %v1866_v32, 4 }
0x216e   :  { %vm1868_vm5 = vcmp.lt.s32.totalorder %v1866_v32, %v1867_v53 }
0x216f   :  { %v1869_v14 = vsel %vm1868_vm5, %v1866_v32, %v1867_v53 }
0x2170   :  { %v1870_v59 = vrot.slane %v1869_v14, 2 }
0x2172   :  { %vm1871_vm8 = vcmp.lt.s32.totalorder %v1869_v14, %v1870_v59 }
0x2173   :  { %v1872_v60 = vsel %vm1871_vm8, %v1869_v14, %v1870_v59 }
0x2174   :  { %v1873_v27 = vrot.slane %v1872_v60, 1 }
0x2176   :  { %vm1874_vm6 = vcmp.lt.s32.totalorder %v1872_v60, %v1873_v27 }
0x2177   :  { %v1875_v29 = vsel %vm1874_vm6, %v1872_v60, %v1873_v27 }
0x2178   :  { %vm1878_vm7 = vcmp.eq.s32.totalorder %v2535_v13, %v1875_v29 }
0x2179   :  { %v1879_v22 = vsel %vm1878_vm7, %v1391_v61, 11 }
0x217a   :  { %v1880_v46 = vsel %vm1364_vm13, %v1879_v22, 2147483647  ;;  %vm1784_vm13 = vcmp.eq.s32.totalorder %v2535_v13, 5 }
0x217b   :  { %v1882_v63 = vshra.s32 %v1880_v46, 16  ;;  %v1881_v38 = vand.u32 65535, %v1880_v46 }
0x217d   :  { %v1884_v18 = vcvt.s32.f32 %v1882_v63  ;;  %v1883_v2 = vcvt.s32.f32 %v1881_v38 }
0x217f   :  { %1885 = vmin.xlane.f32.xlu1 %v1884_v18 }
0x2190   :  { %1742 = vperm.xlu1 %2234, %v3009_v11  }
0x220c   :  { %v1886_v9 = vpop.xlane.xlu1 %1885 }
0x220d   :  { %vm1887_vm14 = vcmp.eq.f32.partialorder %v1884_v18, %v1886_v9  ;;  %v1892_v7 = vcvt.f32.s32 %v1886_v9 }
0x220e   :  { %v1888_v55 = vsel %vm1887_vm14, %v1883_v2, inf }
0x220f   :  { %1889 = vmin.xlane.f32.xlu0 %v1888_v55  ;;  %v1893_v51 = vshll.u32 %v1892_v7, 16 }
0x2210   :  { %v1743_v1 = vpop.permute.xlu1 %1742 }
0x2211   :  { %v1744_v6 = vsel %vm1740_vm15, %v1743_v1, 0 }
0x2212   :  { %v1766_v50 = vsel %vm1762_vm4, %v3033_v49, %v1744_v6 }
0x2213   :  { %v1785_v11 = vsel %vm1784_vm13, %v3043_v26, %v1766_v50 }
0x2214   :  { %v1803_v52 = vsel %vm1802_vm9, %v3054_v57, %v1785_v11 }
0x2225   :  { %1901 = vperm.xlu0 %2233, %v3001_v56   ;;  %v1822_v56 = vsel %vm1821_vm11, %v3074_v20, %v1803_v52 }
0x2226   :  { %v1840_v8 = vsel %vm1839_vm2, %v3085_v16, %v1822_v56 }
0x2227   :  { %v1859_v31 = vsel %vm1858_vm10, %v3101_v34, %v1840_v8 }
0x2228   :  { %v1877_v57 = vsel %vm1876_vm0, %v1875_v29, %v1859_v31 }
0x229c   :  { %v1890_v10 = vpop.xlane.xlu0 %1889 }
0x229d   :  { %v1891_v49 = vcvt.f32.s32 %v1890_v10 }
0x229f   :  { %v1894_v26 = vadd.s32 %v1893_v51, %v1891_v49 }
0x22a1   :  { %v1896_v54 = vsel %vm1895_vm1, %v1894_v26, %v1877_v57 }
0x22a2   :  { %v1897_v20 = vcvt.s32.f32 %v1896_v54 }
0x22a4   :  { %v1902_v16 = vpop.permute.xlu0 %1901 }
0x22a5   :  { %v1904_v0 = vsel %vm1898_vm3, %v1902_v16, %v1897_v20 }
0x22a6   :  { %1905 = vst [vmem:[#allocation10] sm:$0x1] %v1904_v0 }
0x22a7   :  { %2370 = shalt.err (!%p2367_p3)
}
0x22a8   :  { %s2371_s22 = scalar_lea.hbm %s3150_s10, 16 }
0x22a9   :  { %p2372_p4 = scmp.ne.s32.totalorder %s3150_s10, %s2371_s22  ;;  %p2375_p5 = scmp.lt.u32.totalorder %s2371_s22, %s3150_s10 }
0x22ab   :  { %p2377_p6 = pnand %p2375_p5, %p2372_p4 }
0x22ad   :  { %2380 = shalt.err (!%p2377_p6)
}
0x22ae   :  { %1915 = dma.vmem_to_hbm [thread:$0]  %s1913_s16, 16, %s3150_s10, [#allocation4]  }
0x22af   :  { %2387 = dma.done.wait [#allocation4], 16  }
0x22b0   :  { %2388 = vsyncadd [#allocation4], 4294967280 }
0x22b1   :  { %1919 = vsyncpa [#allocation3], 1 }
0x22b2   :  { %1920 = vsyncpa [#allocation8], 1 }
0x22b3   :  { %1921 = vsyncpa [#allocation4], 1 }
0x22b4   :  { %1922 = vsyncpa [#allocation5], 1 }

</bundles_post_ra>
